<compile_context>
chip_gen: v5e
topology: v5e:2x2
jax: 0.10.0
libtpu: 0.0.40
codegen_flags: <defaults>
</compile_context>

<pallas_src>
import functools

import jax
import jax.numpy as jnp
import numpy as np
from jax import lax
from jax.experimental import pallas as pl
from jax.experimental.pallas import tpu as pltpu

BN_EPS = 1e-5          # torch.nn.BatchNorm2d default eps
LEAKY_SLOPE = 0.01     # F.leaky_relu default negative_slope
VMEM_LIMIT = 32 * 1024 * 1024


def _cdiv(a, b):
    return -(-a // b)


def _cparams(n_axes):
    return pltpu.CompilerParams(dimension_semantics=("parallel",) * n_axes,
                                vmem_limit_bytes=VMEM_LIMIT)


# ----------------------------- Pallas kernels ------------------------------

def _matmul_bias_kernel(x_ref, w_ref, b_ref, o_ref):
    # x: (Ci, TP)  w: (Cout, Ci)  b: (Cout, 1)  o: (Cout, TP); lane-dense output.
    o_ref[...] = (jnp.dot(w_ref[...], x_ref[...],
                          preferred_element_type=jnp.float32) + b_ref[...])


def _conv_taps(xa_ref, xb_ref, w_ref, b_ref, offsets, tq):
    # Halo window = this lane tile + the next lane tile; accumulate the K*K
    # transposed-conv taps as (Co, Ci) @ (Ci, TQ) matmuls (in-kernel "im2col").
    win = jnp.concatenate([xa_ref[0], xb_ref[0]], axis=-1)          # (Ci, 2*TQ)
    co = w_ref.shape[1]
    acc = b_ref[...] + jnp.zeros((co, tq), jnp.float32)
    for t, off in enumerate(offsets):                               # static unrolled taps
        acc = acc + jnp.dot(w_ref[t], win[:, off:off + tq],
                            preferred_element_type=jnp.float32)
    return acc


def _conv_kernel(xa_ref, xb_ref, w_ref, b_ref, o_ref, *, offsets, tq):
    # Plain transposed conv (no activation / BN) -- used for conv1d when isLast.
    o_ref[0] = _conv_taps(xa_ref, xb_ref, w_ref, b_ref, offsets, tq)


def _conv_act_stats_kernel(xa_ref, xb_ref, w_ref, b_ref, m_ref, o_ref, s_ref,
                           *, offsets, tq):
    # conv + bias + LeakyReLU, plus per-tile masked partial sums / sum-of-squares
    # (pass 1 of two-pass training-mode BatchNorm).
    acc = _conv_taps(xa_ref, xb_ref, w_ref, b_ref, offsets, tq)
    acc = jnp.where(acc > 0, acc, LEAKY_SLOPE * acc)                # leaky_relu
    o_ref[0] = acc
    av = acc * m_ref[...]                                           # zero out junk/pad lanes
    s_ref[0, 0] = jnp.concatenate(
        [jnp.sum(av, axis=-1, keepdims=True),
         jnp.sum(av * av, axis=-1, keepdims=True)], axis=-1)        # (Co, 2)


def _scale_shift_kernel(x_ref, s_ref, t_ref, o_ref):
    # pass 2 of BatchNorm: y = x * scale[c] + shift[c]
    o_ref[0] = x_ref[0] * s_ref[...] + t_ref[...]


# --------------------------- layers built on them ---------------------------

def upsample_transpose(x_nchw, wt, bias, s, tp=512):
    """ConvTranspose2d(kernel_size=s, stride=s, padding=0): out = (B, Co, s*H, s*W)."""
    B, Ci, H, W = x_nchw.shape
    Co = wt.shape[1]
    P = B * H * W
    n_p = _cdiv(P, tp)
    p_pad = n_p * tp
    x2 = jnp.transpose(x_nchw, (1, 0, 2, 3)).reshape(Ci, P)         # channels on sublanes
    x2 = jnp.pad(x2, ((0, 0), (0, p_pad - P)))
    wf = jnp.transpose(wt, (1, 2, 3, 0)).reshape(Co * s * s, Ci)    # rows ordered (co, a, c)
    bf = jnp.repeat(bias, s * s).reshape(Co * s * s, 1)
    y2 = pl.pallas_call(
        _matmul_bias_kernel,
        out_shape=jax.ShapeDtypeStruct((Co * s * s, p_pad), jnp.float32),
        grid=(n_p,),
        in_specs=[pl.BlockSpec((Ci, tp), lambda j: (0, j)),
                  pl.BlockSpec((Co * s * s, Ci), lambda j: (0, 0)),
                  pl.BlockSpec((Co * s * s, 1), lambda j: (0, 0))],
        out_specs=pl.BlockSpec((Co * s * s, tp), lambda j: (0, j)),
        compiler_params=_cparams(1),
    )(x2, wf, bf)
    # pixel interleave of the stride-s transposed conv (layout plumbing)
    y = y2[:, :P].reshape(Co, s, s, B, H, W)
    y = jnp.transpose(y, (3, 0, 4, 1, 5, 2)).reshape(B, Co, s * H, s * W)
    return y


def _conv_inputs(x_nchw, wt, K, pad, tq=None):
    """Build lane-dense flattened operands for the tap-accumulation conv kernel."""
    B, Ci, H, W = x_nchw.shape
    Co = wt.shape[1]
    pe = K - 1 - pad                       # stride-1 transposed conv == conv with flipped kernel
    Ho, Wo = H + K - 1 - 2 * pad, W + K - 1 - 2 * pad
    Hp, Wp = H + 2 * pe, W + 2 * pe
    max_off = (K - 1) * (Wp + 1)           # largest tap offset in the flattened axis
    if tq is None:
        tq = max(512, 128 * _cdiv(max_off, 128))    # tile must cover the tap halo
    assert tq % 128 == 0 and tq >= max_off
    Q = Ho * Wp                            # "extended" output positions per image
    n_q = _cdiv(Q, tq)
    l_pad = (n_q + 1) * tq                 # +1 block so the halo (next-tile) read is in range
    xp = jnp.pad(x_nchw, ((0, 0), (0, 0), (pe, pe), (pe, pe)))
    xf = jnp.pad(xp.reshape(B, Ci, Hp * Wp), ((0, 0), (0, 0), (0, l_pad - Hp * Wp)))
    wreg = jnp.transpose(wt, (2, 3, 0, 1))[::-1, ::-1]               # (K, K, Ci, Co), flipped
    w_taps = jnp.transpose(wreg.reshape(K * K, Ci, Co), (0, 2, 1))   # (K*K, Co, Ci)
    offsets = tuple(kh * Wp + kw for kh in range(K) for kw in range(K))
    geo = dict(B=B, Ci=Ci, Co=Co, Ho=Ho, Wo=Wo, Wp=Wp, Q=Q, tq=tq, n_q=n_q)
    return xf, w_taps, offsets, geo


def _extended_to_nchw(yE, geo):
    B, Co, Ho, Wo, Wp = geo["B"], geo["Co"], geo["Ho"], geo["Wo"], geo["Wp"]
    return yE[:, :, :Ho * Wp].reshape(B, Co, Ho, Wp)[:, :, :, :Wo]


def conv_transpose_s1_plain(x_nchw, wt, bias, K, pad):
    """ConvTranspose2d(stride=1, padding=pad), no activation / BN (isLast conv1d)."""
    xf, w_taps, offsets, geo = _conv_inputs(x_nchw, wt, K, pad)
    B, Ci, Co, tq, n_q = geo["B"], geo["Ci"], geo["Co"], geo["tq"], geo["n_q"]
    kern = functools.partial(_conv_kernel, offsets=offsets, tq=tq)
    outE = pl.pallas_call(
        kern,
        out_shape=jax.ShapeDtypeStruct((B, Co, n_q * tq), jnp.float32),
        grid=(B, n_q),
        in_specs=[pl.BlockSpec((1, Ci, tq), lambda b, j: (b, 0, j)),
                  pl.BlockSpec((1, Ci, tq), lambda b, j: (b, 0, j + 1)),   # halo tile
                  pl.BlockSpec((K * K, Co, Ci), lambda b, j: (0, 0, 0)),
                  pl.BlockSpec((Co, 1), lambda b, j: (0, 0))],
        out_specs=pl.BlockSpec((1, Co, tq), lambda b, j: (b, 0, j)),
        compiler_params=_cparams(2),
    )(xf, xf, w_taps, bias.reshape(Co, 1))
    return _extended_to_nchw(outE, geo)


def conv_transpose_s1_act_bn(x_nchw, wt, bias, K, pad, gamma, beta):
    """ConvTranspose2d(stride=1) -> LeakyReLU -> BatchNorm2d (training batch stats)."""
    xf, w_taps, offsets, geo = _conv_inputs(x_nchw, wt, K, pad)
    B, Ci, Co = geo["B"], geo["Ci"], geo["Co"]
    Ho, Wo, Wp, Q = geo["Ho"], geo["Wo"], geo["Wp"], geo["Q"]
    tq, n_q = geo["tq"], geo["n_q"]

    # validity mask over the extended flattened axis (drops junk columns / tail pad)
    qidx = jnp.arange(n_q * tq, dtype=jnp.int32)
    mask = (((qidx % Wp) < Wo) & (qidx < Q)).astype(jnp.float32).reshape(1, n_q * tq)

    kern = functools.partial(_conv_act_stats_kernel, offsets=offsets, tq=tq)
    outE, stats = pl.pallas_call(
        kern,
        out_shape=(jax.ShapeDtypeStruct((B, Co, n_q * tq), jnp.float32),
                   jax.ShapeDtypeStruct((B, n_q, Co, 2), jnp.float32)),
        grid=(B, n_q),
        in_specs=[pl.BlockSpec((1, Ci, tq), lambda b, j: (b, 0, j)),
                  pl.BlockSpec((1, Ci, tq), lambda b, j: (b, 0, j + 1)),   # halo tile
                  pl.BlockSpec((K * K, Co, Ci), lambda b, j: (0, 0, 0)),
                  pl.BlockSpec((Co, 1), lambda b, j: (0, 0)),
                  pl.BlockSpec((1, tq), lambda b, j: (0, j))],
        out_specs=(pl.BlockSpec((1, Co, tq), lambda b, j: (b, 0, j)),
                   pl.BlockSpec((1, 1, Co, 2), lambda b, j: (b, j, 0, 0))),
        compiler_params=_cparams(2),
    )(xf, xf, w_taps, bias.reshape(Co, 1), mask)

    # reduce per-tile partials -> per-channel scale / shift (tiny, plain JAX)
    n = B * Ho * Wo
    ssum = jnp.sum(stats[..., 0], axis=(0, 1))
    ssq = jnp.sum(stats[..., 1], axis=(0, 1))
    mean = ssum / n
    var = ssq / n - mean * mean                       # biased variance (training-mode BN)
    scale = gamma / jnp.sqrt(var + BN_EPS)
    shift = beta - mean * scale

    yE = pl.pallas_call(
        _scale_shift_kernel,
        out_shape=jax.ShapeDtypeStruct((B, Co, n_q * tq), jnp.float32),
        grid=(B, n_q),
        in_specs=[pl.BlockSpec((1, Co, tq), lambda b, j: (b, 0, j)),
                  pl.BlockSpec((Co, 1), lambda b, j: (0, 0)),
                  pl.BlockSpec((Co, 1), lambda b, j: (0, 0))],
        out_specs=pl.BlockSpec((1, Co, tq), lambda b, j: (b, 0, j)),
        compiler_params=_cparams(2),
    )(outE, scale.reshape(Co, 1), shift.reshape(Co, 1))
    return _extended_to_nchw(yE, geo)


# ------------------------------ d_block module ------------------------------

def init_d_block_params(key, inp, out, isLast, ksize, pad, ds_ksize, ds_stride):
    assert ds_ksize == ds_stride, "kernel assumes non-overlapping upsampling (ds_ksize == ds_stride)"
    mid = inp // 2
    ks = jax.random.split(key, 10)

    def w(k, shape):
        return 0.1 * jax.random.normal(k, shape, jnp.float32)

    cu = inp if isLast else (inp - out)      # self.us channel count
    p = dict(
        # ConvTranspose2d weights in torch layout (in_ch, out_ch, kH, kW)
        us_w=w(ks[0], (cu, cu, ds_ksize, ds_ksize)), us_b=w(ks[1], (cu,)),
        c2_w=w(ks[2], (inp, mid, ksize, ksize)), c2_b=w(ks[3], (mid,)),
        bn2_g=1.0 + 0.1 * jax.random.normal(ks[4], (mid,), jnp.float32),
        bn2_b=0.1 * jax.random.normal(ks[5], (mid,), jnp.float32),
        c1_w=w(ks[6], (mid, out, ksize, ksize)), c1_b=w(ks[7], (out,)),
    )
    if not isLast:
        p["bn1_g"] = 1.0 + 0.1 * jax.random.normal(ks[8], (out,), jnp.float32)
        p["bn1_b"] = 0.1 * jax.random.normal(ks[9], (out,), jnp.float32)
    return p


def d_block_forward(params, x_nchw, idx, size, isLast, skip_nchw, *, ksize, pad, stride):
    """Mirrors d_block.forward(x, idx, size, isLast, skip); `idx` is unused (as in PyTorch)."""
    del idx
    x = x_nchw.astype(jnp.float32)
    x = upsample_transpose(x, params["us_w"], params["us_b"], stride)   # self.us(x, output_size=size)
    assert x.shape[2:] == tuple(size)
    if not isLast:
        x = jnp.concatenate([x, skip_nchw.astype(jnp.float32)], axis=1)  # torch.cat(dim=1)
    # x = bn2d(leaky_relu(conv2d(x)))
    x = conv_transpose_s1_act_bn(x, params["c2_w"], params["c2_b"], ksize, pad,
                                 params["bn2_g"], params["bn2_b"])
    if isLast:
        x = conv_transpose_s1_plain(x, params["c1_w"], params["c1_b"], ksize, pad)
    else:
        x = conv_transpose_s1_act_bn(x, params["c1_w"], params["c1_b"], ksize, pad,
                                     params["bn1_g"], params["bn1_b"])
    return x                                                             # NCHW


# ------------------------- pure-JAX reference (check) ------------------------

def _ref_conv_t_s1(x_nhwc, wt, bias, K, pad):
    pe = K - 1 - pad
    xpad = jnp.pad(x_nhwc, ((0, 0), (pe, pe), (pe, pe), (0, 0)))
    wreg = jnp.transpose(wt, (2, 3, 0, 1))[::-1, ::-1]
    y = lax.conv_general_dilated(xpad, wreg, (1, 1), 'VALID',
                                 dimension_numbers=('NHWC', 'HWIO', 'NHWC'))
    return y + bias[None, None, None, :]


def _ref_bn_train(a, g, b):
    m = jnp.mean(a, axis=(0, 1, 2), keepdims=True)
    v = jnp.mean((a - m) ** 2, axis=(0, 1, 2), keepdims=True)
    return g * (a - m) / jnp.sqrt(v + BN_EPS) + b


def _ref_leaky(a):
    return jnp.where(a > 0, a, LEAKY_SLOPE * a)


def _ref_upsample(x_nhwc, wt, bias, s):
    B, H, W, _ = x_nhwc.shape
    Co = wt.shape[1]
    y = jnp.einsum('bijc,cdkl->bijkld', x_nhwc, wt) + bias
    return jnp.transpose(y, (0, 1, 3, 2, 4, 5)).reshape(B, s * H, s * W, Co)


def d_block_forward_ref(params, x_nchw, idx, size, isLast, skip_nchw, *, ksize, pad, stride):
    del idx
    x = jnp.transpose(x_nchw, (0, 2, 3, 1)).astype(jnp.float32)
    x = _ref_upsample(x, params["us_w"], params["us_b"], stride)
    if not isLast:
        skip = jnp.transpose(skip_nchw, (0, 2, 3, 1)).astype(jnp.float32)
        x = jnp.concatenate([x, skip], axis=-1)
    x = _ref_bn_train(_ref_leaky(_ref_conv_t_s1(x, params["c2_w"], params["c2_b"], ksize, pad)),
                      params["bn2_g"], params["bn2_b"])
    if isLast:
        x = _ref_conv_t_s1(x, params["c1_w"], params["c1_b"], ksize, pad)
    else:
        x = _ref_bn_train(_ref_leaky(_ref_conv_t_s1(x, params["c1_w"], params["c1_b"], ksize, pad)),
                          params["bn1_g"], params["bn1_b"])
    return jnp.transpose(x, (0, 3, 1, 2))


# ----------------------------------- main ------------------------------------

if __name__ == "__main__":
    key = jax.random.PRNGKey(0)
    k_par, k_x, k_skip = jax.random.split(key, 3)

    # d_block(inp=4, out=2, isLast=False, ksize=3, pad=1, ds_ksize=2, ds_stride=2)
    inp, out, ksize, pad, ds_ksize, ds_stride = 4, 2, 3, 1, 2, 2
    isLast = False
    params = init_d_block_params(k_par, inp, out, isLast, ksize, pad, ds_ksize, ds_stride)

    B, Hin, Win = 2, 16, 16
    x = jax.random.normal(k_x, (B, inp - out, Hin, Win), jnp.float32)          # NCHW, like PyTorch
    skip = jax.random.normal(k_skip, (B, out, 2 * Hin, 2 * Win), jnp.float32)   # NCHW skip feature
    size = (2 * Hin, 2 * Win)                                                   # output_size for self.us

    def run(p, xx, sk):
        return d_block_forward(p, xx, None, size, isLast, sk,
                               ksize=ksize, pad=pad, stride=ds_stride)

    y = jax.block_until_ready(jax.jit(run)(params, x, skip))

    y_ref = d_block_forward_ref(params, x, None, size, isLast, skip,
                                ksize=ksize, pad=pad, stride=ds_stride)
    assert y.shape == (B, out, 2 * Hin, 2 * Win), y.shape
    np.testing.assert_allclose(np.asarray(y), np.asarray(y_ref), rtol=2e-4, atol=2e-4)
    print("KERNEL_OK")
</pallas_src>

<mosaic_0001>
module attributes {stable_mosaic.version = 11 : i64} {
  func.func @_matmul_bias_kernel(%arg0: i32, %arg1: memref<2x512xf32, #tpu.memory_space<vmem>>, %arg2: memref<8x2xf32, #tpu.memory_space<vmem>>, %arg3: memref<8x1xf32, #tpu.memory_space<vmem>>, %arg4: memref<8x512xf32, #tpu.memory_space<vmem>>) attributes {dimension_semantics = [#tpu.dimension_semantics<parallel>], iteration_bounds = array<i64: 1>, scalar_prefetch = 0 : i64, scratch_operands = 0 : i64, tpu.core_type = #tpu.core_type<tc>, window_params = [{transform_indices = @transform_0, window_bounds = array<i64: 2, 512>}, {pipeline_mode = #tpu.pipeline_mode<synchronous>, transform_indices = @transform_1, window_bounds = array<i64: 8, 2>}, {pipeline_mode = #tpu.pipeline_mode<synchronous>, transform_indices = @transform_2, window_bounds = array<i64: 8, 1>}, {transform_indices = @transform_3, window_bounds = array<i64: 8, 512>}]} {
    %c0 = arith.constant 0 : index
    %c0_0 = arith.constant 0 : index
    %0 = vector.load %arg2[%c0, %c0_0] : memref<8x2xf32, #tpu.memory_space<vmem>>, vector<8x2xf32>
    %c0_1 = arith.constant 0 : index
    %c0_2 = arith.constant 0 : index
    %1 = vector.load %arg1[%c0_1, %c0_2] : memref<2x512xf32, #tpu.memory_space<vmem>>, vector<2x512xf32>
    %cst = arith.constant dense<0.000000e+00> : vector<8x512xf32>
    %2 = tpu.matmul %0, %1, %cst {dimension_numbers = #tpu.dot_dimension_numbers<[1], [0], [0], [1], [0, 0, 1, 1], [], []>} : vector<8x2xf32>, vector<2x512xf32>, vector<8x512xf32> -> vector<8x512xf32>
    %c0_3 = arith.constant 0 : index
    %c0_4 = arith.constant 0 : index
    %3 = vector.load %arg3[%c0_3, %c0_4] : memref<8x1xf32, #tpu.memory_space<vmem>>, vector<8x1xf32>
    %4 = vector.broadcast %3 : vector<8x1xf32> to vector<8x512xf32>
    %5 = arith.addf %2, %4 : vector<8x512xf32>
    %c0_5 = arith.constant 0 : index
    %c0_6 = arith.constant 0 : index
    %6 = vector.load %arg4[%c0_5, %c0_6] : memref<8x512xf32, #tpu.memory_space<vmem>>, vector<8x512xf32>
    tpu.vector_store %arg4[%c0_5, %c0_6], %5 {strides = array<i32>} : memref<8x512xf32, #tpu.memory_space<vmem>>, vector<8x512xf32>,
    return
  }
  func.func @transform_0(%arg0: i32) -> (i32, i32) {
    %c0_i32 = arith.constant 0 : i32
    %c0_i32_0 = arith.constant 0 : i32
    return %c0_i32, %arg0 : i32, i32
  }
  func.func @transform_1(%arg0: i32) -> (i32, i32) {
    %c0_i32 = arith.constant 0 : i32
    %c0_i32_0 = arith.constant 0 : i32
    %c0_i32_1 = arith.constant 0 : i32
    return %c0_i32, %c0_i32_0 : i32, i32
  }
  func.func @transform_2(%arg0: i32) -> (i32, i32) {
    %c0_i32 = arith.constant 0 : i32
    %c0_i32_0 = arith.constant 0 : i32
    %c0_i32_1 = arith.constant 0 : i32
    return %c0_i32, %c0_i32_0 : i32, i32
  }
  func.func @transform_3(%arg0: i32) -> (i32, i32) {
    %c0_i32 = arith.constant 0 : i32
    %c0_i32_0 = arith.constant 0 : i32
    return %c0_i32, %arg0 : i32, i32
  }
}

module attributes {stable_mosaic.version = 11 : i64} {
  func.func @_conv_act_stats_kernel(%arg0: i32, %arg1: i32, %arg2: memref<1x4x512xf32, #tpu.memory_space<vmem>>, %arg3: memref<1x4x512xf32, #tpu.memory_space<vmem>>, %arg4: memref<9x2x4xf32, #tpu.memory_space<vmem>>, %arg5: memref<2x1xf32, #tpu.memory_space<vmem>>, %arg6: memref<1x512xf32, #tpu.memory_space<vmem>>, %arg7: memref<1x2x512xf32, #tpu.memory_space<vmem>>, %arg8: memref<1x1x2x2xf32, #tpu.memory_space<vmem>>) attributes {dimension_semantics = [#tpu.dimension_semantics<parallel>, #tpu.dimension_semantics<parallel>], iteration_bounds = array<i64: 2, 3>, scalar_prefetch = 0 : i64, scratch_operands = 0 : i64, tpu.core_type = #tpu.core_type<tc>, window_params = [{transform_indices = @transform_0, window_bounds = array<i64: 1, 4, 512>}, {transform_indices = @transform_1, window_bounds = array<i64: 1, 4, 512>}, {pipeline_mode = #tpu.pipeline_mode<synchronous>, transform_indices = @transform_2, window_bounds = array<i64: 9, 2, 4>}, {pipeline_mode = #tpu.pipeline_mode<synchronous>, transform_indices = @transform_3, window_bounds = array<i64: 2, 1>}, {transform_indices = @transform_4, window_bounds = array<i64: 1, 512>}, {transform_indices = @transform_5, window_bounds = array<i64: 1, 2, 512>}, {transform_indices = @transform_6, window_bounds = array<i64: 1, 1, 2, 2>}]} {
    %c0 = arith.constant 0 : index
    %c0_0 = arith.constant 0 : index
    %c0_1 = arith.constant 0 : index
    %0 = vector.load %arg2[%c0, %c0_0, %c0_1] : memref<1x4x512xf32, #tpu.memory_space<vmem>>, vector<1x4x512xf32>
    %1 = vector.shape_cast %0 : vector<1x4x512xf32> to vector<4x512xf32>
    %c0_2 = arith.constant 0 : index
    %c0_3 = arith.constant 0 : index
    %c0_4 = arith.constant 0 : index
    %2 = vector.load %arg3[%c0_2, %c0_3, %c0_4] : memref<1x4x512xf32, #tpu.memory_space<vmem>>, vector<1x4x512xf32>
    %3 = vector.shape_cast %2 : vector<1x4x512xf32> to vector<4x512xf32>
    %4 = tpu.concatenate %1, %3 in 1 : vector<4x512xf32>, vector<4x512xf32> -> vector<4x1024xf32>
    %c0_5 = arith.constant 0 : index
    %c0_6 = arith.constant 0 : index
    %5 = vector.load %arg5[%c0_5, %c0_6] : memref<2x1xf32, #tpu.memory_space<vmem>>, vector<2x1xf32>
    %cst = arith.constant 0.000000e+00 : f32
    %6 = vector.broadcast %cst : f32 to vector<2x512xf32>
    %7 = vector.broadcast %5 : vector<2x1xf32> to vector<2x512xf32>
    %8 = arith.addf %7, %6 : vector<2x512xf32>
    %c0_7 = arith.constant 0 : index
    %c0_8 = arith.constant 0 : index
    %c0_9 = arith.constant 0 : index
    %9 = vector.load %arg4[%c0_7, %c0_8, %c0_9] : memref<9x2x4xf32, #tpu.memory_space<vmem>>, vector<1x2x4xf32>
    %10 = vector.shape_cast %9 : vector<1x2x4xf32> to vector<2x4xf32>
    %11 = vector.extract_strided_slice %4 {offsets = [0, 0], sizes = [4, 512], strides = [1, 1]} : vector<4x1024xf32> to vector<4x512xf32>
    %cst_10 = arith.constant dense<0.000000e+00> : vector<2x512xf32>
    %12 = tpu.matmul %10, %11, %cst_10 {dimension_numbers = #tpu.dot_dimension_numbers<[1], [0], [0], [1], [0, 0, 1, 1], [], []>} : vector<2x4xf32>, vector<4x512xf32>, vector<2x512xf32> -> vector<2x512xf32>
    %13 = arith.addf %8, %12 : vector<2x512xf32>
    %c1 = arith.constant 1 : index
    %c0_11 = arith.constant 0 : index
    %c0_12 = arith.constant 0 : index
    %14 = vector.load %arg4[%c1, %c0_11, %c0_12] : memref<9x2x4xf32, #tpu.memory_space<vmem>>, vector<1x2x4xf32>
    %15 = vector.shape_cast %14 : vector<1x2x4xf32> to vector<2x4xf32>
    %16 = vector.extract_strided_slice %4 {offsets = [0, 1], sizes = [4, 512], strides = [1, 1]} : vector<4x1024xf32> to vector<4x512xf32>
    %cst_13 = arith.constant dense<0.000000e+00> : vector<2x512xf32>
    %17 = tpu.matmul %15, %16, %cst_13 {dimension_numbers = #tpu.dot_dimension_numbers<[1], [0], [0], [1], [0, 0, 1, 1], [], []>} : vector<2x4xf32>, vector<4x512xf32>, vector<2x512xf32> -> vector<2x512xf32>
    %18 = arith.addf %13, %17 : vector<2x512xf32>
    %c2 = arith.constant 2 : index
    %c0_14 = arith.constant 0 : index
    %c0_15 = arith.constant 0 : index
    %19 = vector.load %arg4[%c2, %c0_14, %c0_15] : memref<9x2x4xf32, #tpu.memory_space<vmem>>, vector<1x2x4xf32>
    %20 = vector.shape_cast %19 : vector<1x2x4xf32> to vector<2x4xf32>
    %21 = vector.extract_strided_slice %4 {offsets = [0, 2], sizes = [4, 512], strides = [1, 1]} : vector<4x1024xf32> to vector<4x512xf32>
    %cst_16 = arith.constant dense<0.000000e+00> : vector<2x512xf32>
    %22 = tpu.matmul %20, %21, %cst_16 {dimension_numbers = #tpu.dot_dimension_numbers<[1], [0], [0], [1], [0, 0, 1, 1], [], []>} : vector<2x4xf32>, vector<4x512xf32>, vector<2x512xf32> -> vector<2x512xf32>
    %23 = arith.addf %18, %22 : vector<2x512xf32>
    %c3 = arith.constant 3 : index
    %c0_17 = arith.constant 0 : index
    %c0_18 = arith.constant 0 : index
    %24 = vector.load %arg4[%c3, %c0_17, %c0_18] : memref<9x2x4xf32, #tpu.memory_space<vmem>>, vector<1x2x4xf32>
    %25 = vector.shape_cast %24 : vector<1x2x4xf32> to vector<2x4xf32>
    %26 = vector.extract_strided_slice %4 {offsets = [0, 34], sizes = [4, 512], strides = [1, 1]} : vector<4x1024xf32> to vector<4x512xf32>
    %cst_19 = arith.constant dense<0.000000e+00> : vector<2x512xf32>
    %27 = tpu.matmul %25, %26, %cst_19 {dimension_numbers = #tpu.dot_dimension_numbers<[1], [0], [0], [1], [0, 0, 1, 1], [], []>} : vector<2x4xf32>, vector<4x512xf32>, vector<2x512xf32> -> vector<2x512xf32>
    %28 = arith.addf %23, %27 : vector<2x512xf32>
    %c4 = arith.constant 4 : index
    %c0_20 = arith.constant 0 : index
    %c0_21 = arith.constant 0 : index
    %29 = vector.load %arg4[%c4, %c0_20, %c0_21] : memref<9x2x4xf32, #tpu.memory_space<vmem>>, vector<1x2x4xf32>
    %30 = vector.shape_cast %29 : vector<1x2x4xf32> to vector<2x4xf32>
    %31 = vector.extract_strided_slice %4 {offsets = [0, 35], sizes = [4, 512], strides = [1, 1]} : vector<4x1024xf32> to vector<4x512xf32>
    %cst_22 = arith.constant dense<0.000000e+00> : vector<2x512xf32>
    %32 = tpu.matmul %30, %31, %cst_22 {dimension_numbers = #tpu.dot_dimension_numbers<[1], [0], [0], [1], [0, 0, 1, 1], [], []>} : vector<2x4xf32>, vector<4x512xf32>, vector<2x512xf32> -> vector<2x512xf32>
    %33 = arith.addf %28, %32 : vector<2x512xf32>
    %c5 = arith.constant 5 : index
    %c0_23 = arith.constant 0 : index
    %c0_24 = arith.constant 0 : index
    %34 = vector.load %arg4[%c5, %c0_23, %c0_24] : memref<9x2x4xf32, #tpu.memory_space<vmem>>, vector<1x2x4xf32>
    %35 = vector.shape_cast %34 : vector<1x2x4xf32> to vector<2x4xf32>
    %36 = vector.extract_strided_slice %4 {offsets = [0, 36], sizes = [4, 512], strides = [1, 1]} : vector<4x1024xf32> to vector<4x512xf32>
    %cst_25 = arith.constant dense<0.000000e+00> : vector<2x512xf32>
    %37 = tpu.matmul %35, %36, %cst_25 {dimension_numbers = #tpu.dot_dimension_numbers<[1], [0], [0], [1], [0, 0, 1, 1], [], []>} : vector<2x4xf32>, vector<4x512xf32>, vector<2x512xf32> -> vector<2x512xf32>
    %38 = arith.addf %33, %37 : vector<2x512xf32>
    %c6 = arith.constant 6 : index
    %c0_26 = arith.constant 0 : index
    %c0_27 = arith.constant 0 : index
    %39 = vector.load %arg4[%c6, %c0_26, %c0_27] : memref<9x2x4xf32, #tpu.memory_space<vmem>>, vector<1x2x4xf32>
    %40 = vector.shape_cast %39 : vector<1x2x4xf32> to vector<2x4xf32>
    %41 = vector.extract_strided_slice %4 {offsets = [0, 68], sizes = [4, 512], strides = [1, 1]} : vector<4x1024xf32> to vector<4x512xf32>
    %cst_28 = arith.constant dense<0.000000e+00> : vector<2x512xf32>
    %42 = tpu.matmul %40, %41, %cst_28 {dimension_numbers = #tpu.dot_dimension_numbers<[1], [0], [0], [1], [0, 0, 1, 1], [], []>} : vector<2x4xf32>, vector<4x512xf32>, vector<2x512xf32> -> vector<2x512xf32>
    %43 = arith.addf %38, %42 : vector<2x512xf32>
    %c7 = arith.constant 7 : index
    %c0_29 = arith.constant 0 : index
    %c0_30 = arith.constant 0 : index
    %44 = vector.load %arg4[%c7, %c0_29, %c0_30] : memref<9x2x4xf32, #tpu.memory_space<vmem>>, vector<1x2x4xf32>
    %45 = vector.shape_cast %44 : vector<1x2x4xf32> to vector<2x4xf32>
    %46 = vector.extract_strided_slice %4 {offsets = [0, 69], sizes = [4, 512], strides = [1, 1]} : vector<4x1024xf32> to vector<4x512xf32>
    %cst_31 = arith.constant dense<0.000000e+00> : vector<2x512xf32>
    %47 = tpu.matmul %45, %46, %cst_31 {dimension_numbers = #tpu.dot_dimension_numbers<[1], [0], [0], [1], [0, 0, 1, 1], [], []>} : vector<2x4xf32>, vector<4x512xf32>, vector<2x512xf32> -> vector<2x512xf32>
    %48 = arith.addf %43, %47 : vector<2x512xf32>
    %c8 = arith.constant 8 : index
    %c0_32 = arith.constant 0 : index
    %c0_33 = arith.constant 0 : index
    %49 = vector.load %arg4[%c8, %c0_32, %c0_33] : memref<9x2x4xf32, #tpu.memory_space<vmem>>, vector<1x2x4xf32>
    %50 = vector.shape_cast %49 : vector<1x2x4xf32> to vector<2x4xf32>
    %51 = vector.extract_strided_slice %4 {offsets = [0, 70], sizes = [4, 512], strides = [1, 1]} : vector<4x1024xf32> to vector<4x512xf32>
    %cst_34 = arith.constant dense<0.000000e+00> : vector<2x512xf32>
    %52 = tpu.matmul %50, %51, %cst_34 {dimension_numbers = #tpu.dot_dimension_numbers<[1], [0], [0], [1], [0, 0, 1, 1], [], []>} : vector<2x4xf32>, vector<4x512xf32>, vector<2x512xf32> -> vector<2x512xf32>
    %53 = arith.addf %48, %52 : vector<2x512xf32>
    %cst_35 = arith.constant 0.000000e+00 : f32
    %54 = vector.broadcast %cst_35 : f32 to vector<2x512xf32>
    %55 = arith.cmpf ogt, %53, %54 : vector<2x512xf32>
    %cst_36 = arith.constant 0.00999999977 : f32
    %56 = vector.broadcast %cst_36 : f32 to vector<2x512xf32>
    %57 = arith.mulf %56, %53 : vector<2x512xf32>
    %58 = arith.select %55, %53, %57 : vector<2x512xi1>, vector<2x512xf32>
    %c0_37 = arith.constant 0 : index
    %c0_38 = arith.constant 0 : index
    %c0_39 = arith.constant 0 : index
    %59 = vector.load %arg7[%c0_37, %c0_38, %c0_39] : memref<1x2x512xf32, #tpu.memory_space<vmem>>, vector<1x2x512xf32>
    %60 = vector.shape_cast %59 : vector<1x2x512xf32> to vector<2x512xf32>
    %61 = vector.shape_cast %58 : vector<2x512xf32> to vector<1x2x512xf32>
    tpu.vector_store %arg7[%c0_37, %c0_38, %c0_39], %61 {strides = array<i32>} : memref<1x2x512xf32, #tpu.memory_space<vmem>>, vector<1x2x512xf32>,
    %c0_40 = arith.constant 0 : index
    %c0_41 = arith.constant 0 : index
    %62 = vector.load %arg6[%c0_40, %c0_41] : memref<1x512xf32, #tpu.memory_space<vmem>>, vector<1x512xf32>
    %63 = vector.broadcast %62 : vector<1x512xf32> to vector<2x512xf32>
    %64 = arith.mulf %58, %63 : vector<2x512xf32>
    %cst_42 = arith.constant dense<0.000000e+00> : vector<2xf32>
    %65 = vector.multi_reduction <add>, %64, %cst_42 [1] : vector<2x512xf32> to vector<2xf32>
    %66 = vector.shape_cast %65 : vector<2xf32> to vector<2x1xf32>
    %67 = arith.mulf %64, %64 : vector<2x512xf32>
    %cst_43 = arith.constant dense<0.000000e+00> : vector<2xf32>
    %68 = vector.multi_reduction <add>, %67, %cst_43 [1] : vector<2x512xf32> to vector<2xf32>
    %69 = vector.shape_cast %68 : vector<2xf32> to vector<2x1xf32>
    %70 = tpu.concatenate %66, %69 in 1 : vector<2x1xf32>, vector<2x1xf32> -> vector<2x2xf32>
    %c0_44 = arith.constant 0 : index
    %c0_45 = arith.constant 0 : index
    %c0_46 = arith.constant 0 : index
    %c0_47 = arith.constant 0 : index
    %71 = vector.load %arg8[%c0_44, %c0_45, %c0_46, %c0_47] : memref<1x1x2x2xf32, #tpu.memory_space<vmem>>, vector<1x1x2x2xf32>
    %72 = vector.shape_cast %71 : vector<1x1x2x2xf32> to vector<2x2xf32>
    %73 = vector.shape_cast %70 : vector<2x2xf32> to vector<1x1x2x2xf32>
    tpu.vector_store %arg8[%c0_44, %c0_45, %c0_46, %c0_47], %73 {strides = array<i32>} : memref<1x1x2x2xf32, #tpu.memory_space<vmem>>, vector<1x1x2x2xf32>,
    return
  }
  func.func @transform_0(%arg0: i32, %arg1: i32) -> (i32, i32, i32) {
    %c0_i32 = arith.constant 0 : i32
    %c0_i32_0 = arith.constant 0 : i32
    return %arg0, %c0_i32, %arg1 : i32, i32, i32
  }
  func.func @transform_1(%arg0: i32, %arg1: i32) -> (i32, i32, i32) {
    %c1_i32 = arith.constant 1 : i32
    %0 = arith.addi %arg1, %c1_i32 : i32
    %c0_i32 = arith.constant 0 : i32
    %c0_i32_0 = arith.constant 0 : i32
    return %arg0, %c0_i32, %0 : i32, i32, i32
  }
  func.func @transform_2(%arg0: i32, %arg1: i32) -> (i32, i32, i32) {
    %c0_i32 = arith.constant 0 : i32
    %c0_i32_0 = arith.constant 0 : i32
    %c0_i32_1 = arith.constant 0 : i32
    %c0_i32_2 = arith.constant 0 : i32
    return %c0_i32, %c0_i32_0, %c0_i32_1 : i32, i32, i32
  }
  func.func @transform_3(%arg0: i32, %arg1: i32) -> (i32, i32) {
    %c0_i32 = arith.constant 0 : i32
    %c0_i32_0 = arith.constant 0 : i32
    %c0_i32_1 = arith.constant 0 : i32
    return %c0_i32, %c0_i32_0 : i32, i32
  }
  func.func @transform_4(%arg0: i32, %arg1: i32) -> (i32, i32) {
    %c0_i32 = arith.constant 0 : i32
    %c0_i32_0 = arith.constant 0 : i32
    return %c0_i32, %arg1 : i32, i32
  }
  func.func @transform_5(%arg0: i32, %arg1: i32) -> (i32, i32, i32) {
    %c0_i32 = arith.constant 0 : i32
    %c0_i32_0 = arith.constant 0 : i32
    return %arg0, %c0_i32, %arg1 : i32, i32, i32
  }
  func.func @transform_6(%arg0: i32, %arg1: i32) -> (i32, i32, i32, i32) {
    %c0_i32 = arith.constant 0 : i32
    %c0_i32_0 = arith.constant 0 : i32
    %c0_i32_1 = arith.constant 0 : i32
    return %arg0, %arg1, %c0_i32, %c0_i32_0 : i32, i32, i32, i32
  }
}

module attributes {stable_mosaic.version = 11 : i64} {
  func.func @_scale_shift_kernel(%arg0: i32, %arg1: i32, %arg2: memref<1x2x512xf32, #tpu.memory_space<vmem>>, %arg3: memref<2x1xf32, #tpu.memory_space<vmem>>, %arg4: memref<2x1xf32, #tpu.memory_space<vmem>>, %arg5: memref<1x2x512xf32, #tpu.memory_space<vmem>>) attributes {dimension_semantics = [#tpu.dimension_semantics<parallel>, #tpu.dimension_semantics<parallel>], iteration_bounds = array<i64: 2, 3>, scalar_prefetch = 0 : i64, scratch_operands = 0 : i64, tpu.core_type = #tpu.core_type<tc>, window_params = [{transform_indices = @transform_0, window_bounds = array<i64: 1, 2, 512>}, {pipeline_mode = #tpu.pipeline_mode<synchronous>, transform_indices = @transform_1, window_bounds = array<i64: 2, 1>}, {pipeline_mode = #tpu.pipeline_mode<synchronous>, transform_indices = @transform_2, window_bounds = array<i64: 2, 1>}, {transform_indices = @transform_3, window_bounds = array<i64: 1, 2, 512>}]} {
    %c0 = arith.constant 0 : index
    %c0_0 = arith.constant 0 : index
    %c0_1 = arith.constant 0 : index
    %0 = vector.load %arg2[%c0, %c0_0, %c0_1] : memref<1x2x512xf32, #tpu.memory_space<vmem>>, vector<1x2x512xf32>
    %1 = vector.shape_cast %0 : vector<1x2x512xf32> to vector<2x512xf32>
    %c0_2 = arith.constant 0 : index
    %c0_3 = arith.constant 0 : index
    %2 = vector.load %arg3[%c0_2, %c0_3] : memref<2x1xf32, #tpu.memory_space<vmem>>, vector<2x1xf32>
    %3 = vector.broadcast %2 : vector<2x1xf32> to vector<2x512xf32>
    %4 = arith.mulf %1, %3 : vector<2x512xf32>
    %c0_4 = arith.constant 0 : index
    %c0_5 = arith.constant 0 : index
    %5 = vector.load %arg4[%c0_4, %c0_5] : memref<2x1xf32, #tpu.memory_space<vmem>>, vector<2x1xf32>
    %6 = vector.broadcast %5 : vector<2x1xf32> to vector<2x512xf32>
    %7 = arith.addf %4, %6 : vector<2x512xf32>
    %c0_6 = arith.constant 0 : index
    %c0_7 = arith.constant 0 : index
    %c0_8 = arith.constant 0 : index
    %8 = vector.load %arg5[%c0_6, %c0_7, %c0_8] : memref<1x2x512xf32, #tpu.memory_space<vmem>>, vector<1x2x512xf32>
    %9 = vector.shape_cast %8 : vector<1x2x512xf32> to vector<2x512xf32>
    %10 = vector.shape_cast %7 : vector<2x512xf32> to vector<1x2x512xf32>
    tpu.vector_store %arg5[%c0_6, %c0_7, %c0_8], %10 {strides = array<i32>} : memref<1x2x512xf32, #tpu.memory_space<vmem>>, vector<1x2x512xf32>,
    return
  }
  func.func @transform_0(%arg0: i32, %arg1: i32) -> (i32, i32, i32) {
    %c0_i32 = arith.constant 0 : i32
    %c0_i32_0 = arith.constant 0 : i32
    return %arg0, %c0_i32, %arg1 : i32, i32, i32
  }
  func.func @transform_1(%arg0: i32, %arg1: i32) -> (i32, i32) {
    %c0_i32 = arith.constant 0 : i32
    %c0_i32_0 = arith.constant 0 : i32
    %c0_i32_1 = arith.constant 0 : i32
    return %c0_i32, %c0_i32_0 : i32, i32
  }
  func.func @transform_2(%arg0: i32, %arg1: i32) -> (i32, i32) {
    %c0_i32 = arith.constant 0 : i32
    %c0_i32_0 = arith.constant 0 : i32
    %c0_i32_1 = arith.constant 0 : i32
    return %c0_i32, %c0_i32_0 : i32, i32
  }
  func.func @transform_3(%arg0: i32, %arg1: i32) -> (i32, i32, i32) {
    %c0_i32 = arith.constant 0 : i32
    %c0_i32_0 = arith.constant 0 : i32
    return %arg0, %c0_i32, %arg1 : i32, i32, i32
  }
}

module attributes {stable_mosaic.version = 11 : i64} {
  func.func @_conv_act_stats_kernel(%arg0: i32, %arg1: i32, %arg2: memref<1x2x512xf32, #tpu.memory_space<vmem>>, %arg3: memref<1x2x512xf32, #tpu.memory_space<vmem>>, %arg4: memref<9x2x2xf32, #tpu.memory_space<vmem>>, %arg5: memref<2x1xf32, #tpu.memory_space<vmem>>, %arg6: memref<1x512xf32, #tpu.memory_space<vmem>>, %arg7: memref<1x2x512xf32, #tpu.memory_space<vmem>>, %arg8: memref<1x1x2x2xf32, #tpu.memory_space<vmem>>) attributes {dimension_semantics = [#tpu.dimension_semantics<parallel>, #tpu.dimension_semantics<parallel>], iteration_bounds = array<i64: 2, 3>, scalar_prefetch = 0 : i64, scratch_operands = 0 : i64, tpu.core_type = #tpu.core_type<tc>, window_params = [{transform_indices = @transform_0, window_bounds = array<i64: 1, 2, 512>}, {transform_indices = @transform_1, window_bounds = array<i64: 1, 2, 512>}, {pipeline_mode = #tpu.pipeline_mode<synchronous>, transform_indices = @transform_2, window_bounds = array<i64: 9, 2, 2>}, {pipeline_mode = #tpu.pipeline_mode<synchronous>, transform_indices = @transform_3, window_bounds = array<i64: 2, 1>}, {transform_indices = @transform_4, window_bounds = array<i64: 1, 512>}, {transform_indices = @transform_5, window_bounds = array<i64: 1, 2, 512>}, {transform_indices = @transform_6, window_bounds = array<i64: 1, 1, 2, 2>}]} {
    %c0 = arith.constant 0 : index
    %c0_0 = arith.constant 0 : index
    %c0_1 = arith.constant 0 : index
    %0 = vector.load %arg2[%c0, %c0_0, %c0_1] : memref<1x2x512xf32, #tpu.memory_space<vmem>>, vector<1x2x512xf32>
    %1 = vector.shape_cast %0 : vector<1x2x512xf32> to vector<2x512xf32>
    %c0_2 = arith.constant 0 : index
    %c0_3 = arith.constant 0 : index
    %c0_4 = arith.constant 0 : index
    %2 = vector.load %arg3[%c0_2, %c0_3, %c0_4] : memref<1x2x512xf32, #tpu.memory_space<vmem>>, vector<1x2x512xf32>
    %3 = vector.shape_cast %2 : vector<1x2x512xf32> to vector<2x512xf32>
    %4 = tpu.concatenate %1, %3 in 1 : vector<2x512xf32>, vector<2x512xf32> -> vector<2x1024xf32>
    %c0_5 = arith.constant 0 : index
    %c0_6 = arith.constant 0 : index
    %5 = vector.load %arg5[%c0_5, %c0_6] : memref<2x1xf32, #tpu.memory_space<vmem>>, vector<2x1xf32>
    %cst = arith.constant 0.000000e+00 : f32
    %6 = vector.broadcast %cst : f32 to vector<2x512xf32>
    %7 = vector.broadcast %5 : vector<2x1xf32> to vector<2x512xf32>
    %8 = arith.addf %7, %6 : vector<2x512xf32>
    %c0_7 = arith.constant 0 : index
    %c0_8 = arith.constant 0 : index
    %c0_9 = arith.constant 0 : index
    %9 = vector.load %arg4[%c0_7, %c0_8, %c0_9] : memref<9x2x2xf32, #tpu.memory_space<vmem>>, vector<1x2x2xf32>
    %10 = vector.shape_cast %9 : vector<1x2x2xf32> to vector<2x2xf32>
    %11 = vector.extract_strided_slice %4 {offsets = [0, 0], sizes = [2, 512], strides = [1, 1]} : vector<2x1024xf32> to vector<2x512xf32>
    %cst_10 = arith.constant dense<0.000000e+00> : vector<2x512xf32>
    %12 = tpu.matmul %10, %11, %cst_10 {dimension_numbers = #tpu.dot_dimension_numbers<[1], [0], [0], [1], [0, 0, 1, 1], [], []>} : vector<2x2xf32>, vector<2x512xf32>, vector<2x512xf32> -> vector<2x512xf32>
    %13 = arith.addf %8, %12 : vector<2x512xf32>
    %c1 = arith.constant 1 : index
    %c0_11 = arith.constant 0 : index
    %c0_12 = arith.constant 0 : index
    %14 = vector.load %arg4[%c1, %c0_11, %c0_12] : memref<9x2x2xf32, #tpu.memory_space<vmem>>, vector<1x2x2xf32>
    %15 = vector.shape_cast %14 : vector<1x2x2xf32> to vector<2x2xf32>
    %16 = vector.extract_strided_slice %4 {offsets = [0, 1], sizes = [2, 512], strides = [1, 1]} : vector<2x1024xf32> to vector<2x512xf32>
    %cst_13 = arith.constant dense<0.000000e+00> : vector<2x512xf32>
    %17 = tpu.matmul %15, %16, %cst_13 {dimension_numbers = #tpu.dot_dimension_numbers<[1], [0], [0], [1], [0, 0, 1, 1], [], []>} : vector<2x2xf32>, vector<2x512xf32>, vector<2x512xf32> -> vector<2x512xf32>
    %18 = arith.addf %13, %17 : vector<2x512xf32>
    %c2 = arith.constant 2 : index
    %c0_14 = arith.constant 0 : index
    %c0_15 = arith.constant 0 : index
    %19 = vector.load %arg4[%c2, %c0_14, %c0_15] : memref<9x2x2xf32, #tpu.memory_space<vmem>>, vector<1x2x2xf32>
    %20 = vector.shape_cast %19 : vector<1x2x2xf32> to vector<2x2xf32>
    %21 = vector.extract_strided_slice %4 {offsets = [0, 2], sizes = [2, 512], strides = [1, 1]} : vector<2x1024xf32> to vector<2x512xf32>
    %cst_16 = arith.constant dense<0.000000e+00> : vector<2x512xf32>
    %22 = tpu.matmul %20, %21, %cst_16 {dimension_numbers = #tpu.dot_dimension_numbers<[1], [0], [0], [1], [0, 0, 1, 1], [], []>} : vector<2x2xf32>, vector<2x512xf32>, vector<2x512xf32> -> vector<2x512xf32>
    %23 = arith.addf %18, %22 : vector<2x512xf32>
    %c3 = arith.constant 3 : index
    %c0_17 = arith.constant 0 : index
    %c0_18 = arith.constant 0 : index
    %24 = vector.load %arg4[%c3, %c0_17, %c0_18] : memref<9x2x2xf32, #tpu.memory_space<vmem>>, vector<1x2x2xf32>
    %25 = vector.shape_cast %24 : vector<1x2x2xf32> to vector<2x2xf32>
    %26 = vector.extract_strided_slice %4 {offsets = [0, 34], sizes = [2, 512], strides = [1, 1]} : vector<2x1024xf32> to vector<2x512xf32>
    %cst_19 = arith.constant dense<0.000000e+00> : vector<2x512xf32>
    %27 = tpu.matmul %25, %26, %cst_19 {dimension_numbers = #tpu.dot_dimension_numbers<[1], [0], [0], [1], [0, 0, 1, 1], [], []>} : vector<2x2xf32>, vector<2x512xf32>, vector<2x512xf32> -> vector<2x512xf32>
    %28 = arith.addf %23, %27 : vector<2x512xf32>
    %c4 = arith.constant 4 : index
    %c0_20 = arith.constant 0 : index
    %c0_21 = arith.constant 0 : index
    %29 = vector.load %arg4[%c4, %c0_20, %c0_21] : memref<9x2x2xf32, #tpu.memory_space<vmem>>, vector<1x2x2xf32>
    %30 = vector.shape_cast %29 : vector<1x2x2xf32> to vector<2x2xf32>
    %31 = vector.extract_strided_slice %4 {offsets = [0, 35], sizes = [2, 512], strides = [1, 1]} : vector<2x1024xf32> to vector<2x512xf32>
    %cst_22 = arith.constant dense<0.000000e+00> : vector<2x512xf32>
    %32 = tpu.matmul %30, %31, %cst_22 {dimension_numbers = #tpu.dot_dimension_numbers<[1], [0], [0], [1], [0, 0, 1, 1], [], []>} : vector<2x2xf32>, vector<2x512xf32>, vector<2x512xf32> -> vector<2x512xf32>
    %33 = arith.addf %28, %32 : vector<2x512xf32>
    %c5 = arith.constant 5 : index
    %c0_23 = arith.constant 0 : index
    %c0_24 = arith.constant 0 : index
    %34 = vector.load %arg4[%c5, %c0_23, %c0_24] : memref<9x2x2xf32, #tpu.memory_space<vmem>>, vector<1x2x2xf32>
    %35 = vector.shape_cast %34 : vector<1x2x2xf32> to vector<2x2xf32>
    %36 = vector.extract_strided_slice %4 {offsets = [0, 36], sizes = [2, 512], strides = [1, 1]} : vector<2x1024xf32> to vector<2x512xf32>
    %cst_25 = arith.constant dense<0.000000e+00> : vector<2x512xf32>
    %37 = tpu.matmul %35, %36, %cst_25 {dimension_numbers = #tpu.dot_dimension_numbers<[1], [0], [0], [1], [0, 0, 1, 1], [], []>} : vector<2x2xf32>, vector<2x512xf32>, vector<2x512xf32> -> vector<2x512xf32>
    %38 = arith.addf %33, %37 : vector<2x512xf32>
    %c6 = arith.constant 6 : index
    %c0_26 = arith.constant 0 : index
    %c0_27 = arith.constant 0 : index
    %39 = vector.load %arg4[%c6, %c0_26, %c0_27] : memref<9x2x2xf32, #tpu.memory_space<vmem>>, vector<1x2x2xf32>
    %40 = vector.shape_cast %39 : vector<1x2x2xf32> to vector<2x2xf32>
    %41 = vector.extract_strided_slice %4 {offsets = [0, 68], sizes = [2, 512], strides = [1, 1]} : vector<2x1024xf32> to vector<2x512xf32>
    %cst_28 = arith.constant dense<0.000000e+00> : vector<2x512xf32>
    %42 = tpu.matmul %40, %41, %cst_28 {dimension_numbers = #tpu.dot_dimension_numbers<[1], [0], [0], [1], [0, 0, 1, 1], [], []>} : vector<2x2xf32>, vector<2x512xf32>, vector<2x512xf32> -> vector<2x512xf32>
    %43 = arith.addf %38, %42 : vector<2x512xf32>
    %c7 = arith.constant 7 : index
    %c0_29 = arith.constant 0 : index
    %c0_30 = arith.constant 0 : index
    %44 = vector.load %arg4[%c7, %c0_29, %c0_30] : memref<9x2x2xf32, #tpu.memory_space<vmem>>, vector<1x2x2xf32>
    %45 = vector.shape_cast %44 : vector<1x2x2xf32> to vector<2x2xf32>
    %46 = vector.extract_strided_slice %4 {offsets = [0, 69], sizes = [2, 512], strides = [1, 1]} : vector<2x1024xf32> to vector<2x512xf32>
    %cst_31 = arith.constant dense<0.000000e+00> : vector<2x512xf32>
    %47 = tpu.matmul %45, %46, %cst_31 {dimension_numbers = #tpu.dot_dimension_numbers<[1], [0], [0], [1], [0, 0, 1, 1], [], []>} : vector<2x2xf32>, vector<2x512xf32>, vector<2x512xf32> -> vector<2x512xf32>
    %48 = arith.addf %43, %47 : vector<2x512xf32>
    %c8 = arith.constant 8 : index
    %c0_32 = arith.constant 0 : index
    %c0_33 = arith.constant 0 : index
    %49 = vector.load %arg4[%c8, %c0_32, %c0_33] : memref<9x2x2xf32, #tpu.memory_space<vmem>>, vector<1x2x2xf32>
    %50 = vector.shape_cast %49 : vector<1x2x2xf32> to vector<2x2xf32>
    %51 = vector.extract_strided_slice %4 {offsets = [0, 70], sizes = [2, 512], strides = [1, 1]} : vector<2x1024xf32> to vector<2x512xf32>
    %cst_34 = arith.constant dense<0.000000e+00> : vector<2x512xf32>
    %52 = tpu.matmul %50, %51, %cst_34 {dimension_numbers = #tpu.dot_dimension_numbers<[1], [0], [0], [1], [0, 0, 1, 1], [], []>} : vector<2x2xf32>, vector<2x512xf32>, vector<2x512xf32> -> vector<2x512xf32>
    %53 = arith.addf %48, %52 : vector<2x512xf32>
    %cst_35 = arith.constant 0.000000e+00 : f32
    %54 = vector.broadcast %cst_35 : f32 to vector<2x512xf32>
    %55 = arith.cmpf ogt, %53, %54 : vector<2x512xf32>
    %cst_36 = arith.constant 0.00999999977 : f32
    %56 = vector.broadcast %cst_36 : f32 to vector<2x512xf32>
    %57 = arith.mulf %56, %53 : vector<2x512xf32>
    %58 = arith.select %55, %53, %57 : vector<2x512xi1>, vector<2x512xf32>
    %c0_37 = arith.constant 0 : index
    %c0_38 = arith.constant 0 : index
    %c0_39 = arith.constant 0 : index
    %59 = vector.load %arg7[%c0_37, %c0_38, %c0_39] : memref<1x2x512xf32, #tpu.memory_space<vmem>>, vector<1x2x512xf32>
    %60 = vector.shape_cast %59 : vector<1x2x512xf32> to vector<2x512xf32>
    %61 = vector.shape_cast %58 : vector<2x512xf32> to vector<1x2x512xf32>
    tpu.vector_store %arg7[%c0_37, %c0_38, %c0_39], %61 {strides = array<i32>} : memref<1x2x512xf32, #tpu.memory_space<vmem>>, vector<1x2x512xf32>,
    %c0_40 = arith.constant 0 : index
    %c0_41 = arith.constant 0 : index
    %62 = vector.load %arg6[%c0_40, %c0_41] : memref<1x512xf32, #tpu.memory_space<vmem>>, vector<1x512xf32>
    %63 = vector.broadcast %62 : vector<1x512xf32> to vector<2x512xf32>
    %64 = arith.mulf %58, %63 : vector<2x512xf32>
    %cst_42 = arith.constant dense<0.000000e+00> : vector<2xf32>
    %65 = vector.multi_reduction <add>, %64, %cst_42 [1] : vector<2x512xf32> to vector<2xf32>
    %66 = vector.shape_cast %65 : vector<2xf32> to vector<2x1xf32>
    %67 = arith.mulf %64, %64 : vector<2x512xf32>
    %cst_43 = arith.constant dense<0.000000e+00> : vector<2xf32>
    %68 = vector.multi_reduction <add>, %67, %cst_43 [1] : vector<2x512xf32> to vector<2xf32>
    %69 = vector.shape_cast %68 : vector<2xf32> to vector<2x1xf32>
    %70 = tpu.concatenate %66, %69 in 1 : vector<2x1xf32>, vector<2x1xf32> -> vector<2x2xf32>
    %c0_44 = arith.constant 0 : index
    %c0_45 = arith.constant 0 : index
    %c0_46 = arith.constant 0 : index
    %c0_47 = arith.constant 0 : index
    %71 = vector.load %arg8[%c0_44, %c0_45, %c0_46, %c0_47] : memref<1x1x2x2xf32, #tpu.memory_space<vmem>>, vector<1x1x2x2xf32>
    %72 = vector.shape_cast %71 : vector<1x1x2x2xf32> to vector<2x2xf32>
    %73 = vector.shape_cast %70 : vector<2x2xf32> to vector<1x1x2x2xf32>
    tpu.vector_store %arg8[%c0_44, %c0_45, %c0_46, %c0_47], %73 {strides = array<i32>} : memref<1x1x2x2xf32, #tpu.memory_space<vmem>>, vector<1x1x2x2xf32>,
    return
  }
  func.func @transform_0(%arg0: i32, %arg1: i32) -> (i32, i32, i32) {
    %c0_i32 = arith.constant 0 : i32
    %c0_i32_0 = arith.constant 0 : i32
    return %arg0, %c0_i32, %arg1 : i32, i32, i32
  }
  func.func @transform_1(%arg0: i32, %arg1: i32) -> (i32, i32, i32) {
    %c1_i32 = arith.constant 1 : i32
    %0 = arith.addi %arg1, %c1_i32 : i32
    %c0_i32 = arith.constant 0 : i32
    %c0_i32_0 = arith.constant 0 : i32
    return %arg0, %c0_i32, %0 : i32, i32, i32
  }
  func.func @transform_2(%arg0: i32, %arg1: i32) -> (i32, i32, i32) {
    %c0_i32 = arith.constant 0 : i32
    %c0_i32_0 = arith.constant 0 : i32
    %c0_i32_1 = arith.constant 0 : i32
    %c0_i32_2 = arith.constant 0 : i32
    return %c0_i32, %c0_i32_0, %c0_i32_1 : i32, i32, i32
  }
  func.func @transform_3(%arg0: i32, %arg1: i32) -> (i32, i32) {
    %c0_i32 = arith.constant 0 : i32
    %c0_i32_0 = arith.constant 0 : i32
    %c0_i32_1 = arith.constant 0 : i32
    return %c0_i32, %c0_i32_0 : i32, i32
  }
  func.func @transform_4(%arg0: i32, %arg1: i32) -> (i32, i32) {
    %c0_i32 = arith.constant 0 : i32
    %c0_i32_0 = arith.constant 0 : i32
    return %c0_i32, %arg1 : i32, i32
  }
  func.func @transform_5(%arg0: i32, %arg1: i32) -> (i32, i32, i32) {
    %c0_i32 = arith.constant 0 : i32
    %c0_i32_0 = arith.constant 0 : i32
    return %arg0, %c0_i32, %arg1 : i32, i32, i32
  }
  func.func @transform_6(%arg0: i32, %arg1: i32) -> (i32, i32, i32, i32) {
    %c0_i32 = arith.constant 0 : i32
    %c0_i32_0 = arith.constant 0 : i32
    %c0_i32_1 = arith.constant 0 : i32
    return %arg0, %arg1, %c0_i32, %c0_i32_0 : i32, i32, i32, i32
  }
}

</mosaic_0001>

<bundles_post_ra>
// kernel: run.5
= control target key start
LH: loop header
LB: loop body
LE: loop exit
PB: predicated region body
PF: predicated region fallthrough
CT: control target
= control target key end

     0   :  { %v139_v1 = vmov 0   ;;  %vm32_vm0 = vcmask 1041408   ;;  %vm28_vm1 = vcmask 15360   ;;  %s181_s0 = inlined_call_operand.vmem [shape: f32[2,512], index: 0, kind: input, shape index: {}]   ;;  %s182_s2 = inlined_call_operand.vmem [shape: f32[8,1], index: 2, kind: input, shape index: {}]   ;;  %s183_s1 = inlined_call_operand.vmem [shape: f32[8,2], index: 1, kind: input, shape index: {}]   ;;  %s184_s3 = inlined_call_operand.vmem [shape: f32[8,512], index: 3, kind: output, shape index: {}]  }
   0x1   :  { %v15_v0 = vld [vmem:[%s181_s0] sm:$0xff]  ;;  %138 = vset.pattern.permute.xlu0 %v139_v1 }
   0x2   :  { %v16_v2 = vld [vmem:[%s182_s2] sm:$0xff]  ;;  %23 = vst [vmem:[#allocation1] ss:$4 sm:$0xff] %v15_v0 }
   0x3   :  { %19 = vperm.xlu0 %138, %v16_v2   ;;  %v14_v3 = vld [vmem:[%s183_s1] sm:$0xff] }
   0x9   :  { %v26_v4 = vld.sshfl [vmem:[#allocation1 + $0x10] sm:$0xff pattern:$0x73625140]  ;;  %v27_v5 = vld.sshfl [vmem:[#allocation1 + $0x18] sm:$0xff pattern:$0x73625140] }
   0xa   :  { %133 = vmatpush.msk.msra.mxu2 %vm32_vm0, %v26_v4  ;;  %135 = vmatpush.msk.msra.mxu3 %vm32_vm0, %v27_v5  ;;  %v24_v6 = vld.sshfl [vmem:[#allocation1] sm:$0xff pattern:$0x73625140]  ;;  %v25_v7 = vld.sshfl [vmem:[#allocation1 + $0x8] sm:$0xff pattern:$0x73625140] }
   0xb   :  { %134 = vmatmul.msk.f32.vlgmr.msra.gmra.mxu2 %vm28_vm1, %v14_v3  ;;  %136 = vmatmul.msk.f32.vlgmr.msra.gmra.mxu3 %vm28_vm1, %v14_v3 }
   0xc   :  { %129 = vmatpush.msk.msra.mxu0 %vm32_vm0, %v24_v6  ;;  %131 = vmatpush.msk.msra.mxu1 %vm32_vm0, %v25_v7 }
   0xd   :  { %130 = vmatmul.msk.f32.vlgmr.msra.gmra.mxu0 %vm28_vm1, %v14_v3  ;;  %132 = vmatmul.msk.f32.vlgmr.msra.gmra.mxu1 %vm28_vm1, %v14_v3 }
  0x75   :  { %v20_v8 = vpop.permute.xlu0 %19 }
  0x8a   :  { %v58_v9 = vpop.f32.mrf.mxu0  ;;  %v78_v10 = vpop.f32.mrf.mxu1 }
  0x8b   :  { %v59_v11 = vadd.f32 %v58_v9, %v20_v8  ;;  %v79_v12 = vadd.f32 %v78_v10, %v20_v8 }
  0x8d   :  { %121 = vst [vmem:[%s184_s3] sm:$0xff] %v59_v11 }
  0x8e   :  { %122 = vst [vmem:[%s184_s3 + $0x8] sm:$0xff] %v79_v12  ;;  %v98_v13 = vpop.f32.mrf.mxu2  ;;  %v118_v14 = vpop.f32.mrf.mxu3 }
  0x8f   :  { %v99_v15 = vadd.f32 %v98_v13, %v20_v8  ;;  %v119_v16 = vadd.f32 %v118_v14, %v20_v8 }
  0x91   :  { %123 = vst [vmem:[%s184_s3 + $0x10] sm:$0xff] %v99_v15 }
  0x92   :  { %124 = vst [vmem:[%s184_s3 + $0x18] sm:$0xff] %v119_v16 }

// kernel: run.7
= control target key start
LH: loop header
LB: loop body
LE: loop exit
PB: predicated region body
PF: predicated region fallthrough
CT: control target
= control target key end

     0   :  { %s441_s12 = smov 0   ;;  %s443_s13 = smov 0   ;;  %s498_s0 = inlined_call_operand.vmem [shape: f32[2,2,1536], index: 0, kind: input, shape index: {}]   ;;  %s499_s1 = inlined_call_operand.vmem [shape: f32[2,1], index: 1, kind: input, shape index: {}]   ;;  %s500_s2 = inlined_call_operand.vmem [shape: f32[2,1], index: 2, kind: input, shape index: {}]   ;;  %s501_s3 = inlined_call_operand.vmem [shape: f32[2,2,1536], index: 3, kind: output, shape index: {}]  }
   0x1   :  { %s445_s14 = smov 0   ;;  %s447_s15 = smov 0  }
   0x2   :  { %s449_s16 = smov 0  }
   0x3 LB: > { %s22_s17 = sadd.s32 1, %s409_s14  ;;  %s25_s18 = sadd.s32 1, %s413_s15  ;;  %s417_s16 = sphi %s449_s16, %s13_s16   ;;  %s413_s15 = sphi %s447_s15, %s505_s15   ;;  %s409_s14 = sphi %s445_s14, %s504_s14   ;;  %s405_s13 = sphi %s443_s13, %s503_s13   ;;  %s401_s12 = sphi %s441_s12, %s502_s12  }
   0x4   : > { %p23_p0 = scmp.ge.s32.totalorder %s22_s17, 3  ;;  %p328_p1 = scmp.ge.s32.totalorder %s417_s16, 1 }
   0x5   : > { %p158_p2 = scmp.lt.s32.totalorder %s417_s16, 7 }
   0x6   : > { %s507_s17 = smov (%p23_p0, %s22_s17), 0  ;;  %s509_s18 = smov (!%p23_p0, %s25_s18), %s413_s15 }
   0x7   : > { %p159_p3 = pnand %p328_p1, %p158_p2  ;;  %p27_p4 = scmp.ge.s32.totalorder %s509_s18, 2 }
   0x8   : > { %s329_s23 = sshll.u32 (!%p159_p3), %s401_s12, 2  ;;  %p191_p5 = scmp.lt.s32.totalorder (!%p159_p3), %s405_s13, 1 }
   0x9   : > { %s511_s18 = smov (%p27_p4, %s509_s18), 0  ;;  %162 = sbr.rel (%p159_p3) target bundleno = 144 (0x90), region = 32 }
   0xa   : > { %p193_p6 = scmp.lt.s32.totalorder (!%p159_p3), %s329_s23, 11 }
   0xe   : > { %v211_v0 = vld [vmem:[%s499_s1] sm:$0x3]  ;;  %v419_v1 = vmov 0   ;;  %s513_s13 = smov (!%p191_p5, %s405_s13), 1  ;;  %s515_s23 = smov (!%p193_p6, %s329_s23), 11 }
   0xf   : > { %378 = vset.pattern.permute.xlu0 %v419_v1  ;;  %v222_v2 = vld [vmem:[%s500_s2] sm:$0x3]  ;;  %s335_s24 = smul.u32 12, %s513_s13  ;;  %v420_v3 = vmov 269488144  }
  0x10   : > { %214 = vperm.xlu0 %378, %v211_v0   ;;  %v217_v4 = vunpack.c.l.s4 %v420_v3 }
  0x11   : > { %s196_s25 = sadd.s32 %s335_s24, %s515_s23 }
  0x12   : > { %s330_s26 = sshll.u32 %s196_s25, 1  ;;  %v218_v6 = vunpack.c.0.s8 %v217_v4 }
  0x13   : > { %s198_s29 = scalar_lea.vmem %s498_s0, %s330_s26  ;;  %s208_s5 = scalar_lea.vmem %s501_s3, %s330_s26 }
  0x14   : > { %v210_v8 = vld [vmem:[%s198_s29] sm:$0xff] }
  0x18   : > { %225 = vperm.xlu0 %378, %v222_v2  }
  0x82   : > { %v215_v5 = vpop.permute.xlu0 %214 }
  0x83   : > { %v219_v7 = vperm.slane %v215_v5, %v218_v6 }
  0x85   : > { %v221_v10 = vmul.f32 %v219_v7, %v210_v8 }
  0x8a   : > { %v226_v9 = vpop.permute.xlu0 %225 }
  0x8b   : > { %v230_v11 = vperm.slane %v226_v9, %v218_v6 }
  0x8d   : > { %v232_v12 = vadd.f32 %v230_v11, %v221_v10 }
  0x8f   : > { %233 = vst [vmem:[%s208_s5] sm:$0xff] %v232_v12 }
  0x90 PF: > { %s13_s16 = sadd.s32 1, %s417_s16   ;;  %s502_s12 = smov %s409_s14 }
  0x91   : > { %p10_p7 = scmp.ge.s32.totalorder %s13_s16, 8   ;;  %s503_s13 = smov %s413_s15 }
  0x92   : > { %s504_s14 = smov %s507_s17  ;;  %s505_s15 = smov %s511_s18 }
  0x93   :  { %12 = sbr.rel (!%p10_p7) target bundleno = 3 (0x3), region = 62 }

// kernel: run.6
= control target key start
LH: loop header
LB: loop body
LE: loop exit
PB: predicated region body
PF: predicated region fallthrough
CT: control target
= control target key end

     0   :  { %s1860_s21 = smov 0   ;;  %s1862_s22 = smov 0   ;;  %s2069_s0 = inlined_call_operand.vmem [shape: f32[2,4,2048], index: 0, kind: input, shape index: {}, may-alias: {0,1}]   ;;  %s2070_s1 = inlined_call_operand.vmem [shape: f32[2,4,2048], index: 1, kind: input, shape index: {}, may-alias: {0,1}]   ;;  %s2071_s2 = inlined_call_operand.vmem [shape: f32[9,2,4], index: 2, kind: input, shape index: {}]   ;;  %s2072_s3 = inlined_call_operand.vmem [shape: f32[2,1], index: 3, kind: input, shape index: {}]   ;;  %s2073_s4 = inlined_call_operand.vmem [shape: f32[1,1536], index: 4, kind: input, shape index: {}]   ;;  %s2074_s5 = inlined_call_operand.vmem [shape: f32[2,2,1536], index: 5, kind: output, shape index: {0}]   ;;  %s2075_s6 = inlined_call_operand.vmem [shape: f32[2,3,2,2], index: 6, kind: output, shape index: {1}]  }
   0x1   :  { %s1864_s23 = smov 0   ;;  %s1866_s24 = smov 0  }
   0x2   :  { %s1868_s25 = smov 0  }
   0x3 LB: > { %s26_s26 = sadd.s32 1, %s1806_s23  ;;  %s29_s27 = sadd.s32 1, %s1810_s24  ;;  %s1814_s25 = sphi %s1868_s25, %s17_s25   ;;  %s1810_s24 = sphi %s1866_s24, %s2079_s24   ;;  %s1806_s23 = sphi %s1864_s23, %s2078_s23   ;;  %s1802_s22 = sphi %s1862_s22, %s2077_s22   ;;  %s1798_s21 = sphi %s1860_s21, %s2076_s21  }
   0x4   : > { %p27_p0 = scmp.ge.s32.totalorder %s26_s26, 3  ;;  %p1628_p1 = scmp.ge.s32.totalorder %s1814_s25, 1 }
   0x5   : > { %p269_p2 = scmp.lt.s32.totalorder %s1814_s25, 7 }
   0x6   : > { %s2081_s26 = smov (%p27_p0, %s26_s26), 0  ;;  %s2083_s27 = smov (!%p27_p0, %s29_s27), %s1810_s24 }
   0x7   : > { %p270_p3 = pnand %p1628_p1, %p269_p2  ;;  %p31_p4 = scmp.ge.s32.totalorder %s2083_s27, 2 }
   0x8   : > { %s1893_s28 = sshll.u32 (!%p270_p3), %s1798_s21, 2  ;;  %p330_p5 = scmp.lt.s32.totalorder (!%p270_p3), %s1802_s22, 1 }
   0x9   : > { %s2085_s27 = smov (%p31_p4, %s2083_s27), 0  ;;  %273 = sbr.rel (%p270_p3) target bundleno = 511 (0x1ff), region = 40 }
   0xa   : > { %p332_p6 = scmp.lt.s32.totalorder (!%p270_p3), %s1893_s28, 15  ;;  %s1722_s7 = sadd.s32 (!%p270_p3), 4, %s1893_s28 }
   0xb   : > { %p343_p7 = scmp.lt.s32.totalorder (!%p270_p3), %s1722_s7, 15  ;;  %s1816_s18 = smov (!%p270_p3), 127  }
   0xc   : > { %s1817_s19 = smov (!%p270_p3), 94   ;;  %s1818_s20 = smov (!%p270_p3), 126  }
   0xd   : > { %p352_p8 = scmp.lt.s32.totalorder (!%p270_p3), %s1893_s28, 11  ;;  %p368_p9 = scmp.lt.s32.totalorder (!%p270_p3), %s1798_s21, 2 }
   0xe   : > { %s2087_s22 = smov (!%p330_p5, %s1802_s22), 1  ;;  %s2089_s7 = smov (!%p343_p7, %s1722_s7), 15  ;;  %vm405_vm0 = vcmask 1043456   ;;  %v400_v10 = vld [vmem:[%s2071_s2] sm:$0x3]  ;;  %vm401_vm1 = vcmask 31744  }
   0xf   : > { %s333_s29 = scalar_select %p332_p6, %s1893_s28, 15  ;;  %vm510_vm2 = vcmask 1039360   ;;  %v1647_v17 = vld [vmem:[%s2071_s2 + $0x2] sm:$0x3]  ;;  %vm622_vm3 = vcmask 1031168   ;;  %vm734_vm4 = vcmask 769024  }
  0x10   : > { %s1630_s30 = sshll.u32 %s2087_s22, 4  ;;  %v1656_v26 = vld [vmem:[%s2071_s2 + $0x4] sm:$0x3]  ;;  %v1824_v29 = vmov 0   ;;  %v393_v30 = vld [vmem:[%s2072_s3] sm:$0x3] }
  0x11   : > { %s335_s8 = sadd.s32 %s1630_s30, %s333_s29  ;;  %s346_s13 = sadd.s32 %s1630_s30, %s2089_s7  ;;  %1774 = vset.pattern.permute.xlu1 %v1824_v29  ;;  %1775 = vset.pattern.permute.xlu0 %v1824_v29  ;;  %v1665_v38 = vld [vmem:[%s2071_s2 + $0x6] sm:$0x3]  ;;  %vm846_vm5 = vcmask 760832   ;;  %v1674_v46 = vld [vmem:[%s2071_s2 + $0x8] sm:$0x3]  ;;  %vm958_vm6 = vcmask 752640  }
  0x12   : > { %s1631_s9 = sshll.u32 %s335_s8, 2  ;;  %s1634_s14 = sshll.u32 %s346_s13, 2  ;;  %v1683_v56 = vld [vmem:[%s2071_s2 + $0xa] sm:$0x3]  ;;  %vm1070_vm7 = vcmask 490496   ;;  %vm1182_vm8 = vcmask 482304  }
  0x13   : > { %s337_s12 = scalar_lea.vmem %s2069_s0, %s1631_s9  ;;  %s348_s17 = scalar_lea.vmem %s2070_s1, %s1634_s14  ;;  %vm1294_vm9 = vcmask 474112   ;;  %vm1415_vm14 = vcmask 1045508   ;;  %vm1413_vm15 = vcmask 1041408  }
  0x14   : > { %v375_v0 = vld [vmem:[%s337_s12 + $0x8] sm:$0xff]  ;;  %v374_v1 = vld [vmem:[%s337_s12] sm:$0xff]  ;;  %s1819_s29 = smov 93   ;;  %s1820_s30 = smov 92  }
  0x15   : > { %382 = vst [vmem:[#allocation1 + $0x10] ss:$2 sm:$0xff] %v375_v0  ;;  %v377_v2 = vld [vmem:[%s348_s17 + $0x8] sm:$0xff]  ;;  %v376_v3 = vld [vmem:[%s348_s17] sm:$0xff]  ;;  %s1821_s7 = smov 60   ;;  %s1822_s8 = smov 59  }
  0x16   : > { %380 = vst [vmem:[#allocation1] ss:$2 sm:$0xff] %v374_v1  ;;  %s1823_s9 = smov 58   ;;  %v1692_v1 = vld [vmem:[%s2071_s2 + $0xc] sm:$0x3]  ;;  %s2091_s28 = smov (!%p352_p8, %s1893_s28), 11 }
  0x17   : > { %s354_s16 = scalar_lea.vmem %s2073_s4, %s2091_s28  ;;  %s1723_s17 = smul.u32 12, %s2087_s22 }
  0x18   : > { %s2093_s21 = smov (!%p368_p9, %s1798_s21), 2 }
  0x1c   : > { %v385_v4 = vld.sshfl [vmem:[#allocation1 + $0x10] sm:$0xff pattern:$0x75316420]  ;;  %v386_v5 = vld.sshfl [vmem:[#allocation1 + $0x18] sm:$0xff pattern:$0x75316420] }
  0x1d   : > { %504 = vrot.lane.b32.xlu0 %v385_v4, %s1816_s18  ;;  %v383_v6 = vld.sshfl [vmem:[#allocation1] sm:$0xff pattern:$0x75316420]  ;;  %v384_v7 = vld.sshfl [vmem:[#allocation1 + $0x8] sm:$0xff pattern:$0x75316420]  ;;  %1643 = vmatpush.msk.msra.mxu2 %vm405_vm0, %v385_v4 }
  0x1e   : > { %500 = vrot.lane.b32.xlu1 %v383_v6, %s1816_s18  ;;  %502 = vrot.lane.b32.xlu2 %v384_v7, %s1816_s18  ;;  %391 = vst [vmem:[#allocation1 + $0x10] ss:$2 sm:$0xff] %v377_v2 }
  0x1f   : > { %389 = vst [vmem:[#allocation1] ss:$2 sm:$0xff] %v376_v3  ;;  %1641 = vmatpush.msk.msra.mxu1 %vm405_vm0, %v384_v7  ;;  %1639 = vmatpush.msk.msra.mxu0 %vm405_vm0, %v383_v6 }
  0x20   : > { %1645 = vmatpush.msk.msra.mxu3 %vm405_vm0, %v386_v5  ;;  %1644 = vmatmul.msk.f32.vlgmr.msra.gmra.mxu2 %vm401_vm1, %v400_v10 }
  0x21   : > { %1642 = vmatmul.msk.f32.vlgmr.msra.gmra.mxu1 %vm401_vm1, %v400_v10  ;;  %1646 = vmatmul.msk.f32.vlgmr.msra.gmra.mxu3 %vm401_vm1, %v400_v10 }
  0x22   : > { %1640 = vmatmul.msk.f32.vlgmr.msra.gmra.mxu0 %vm401_vm1, %v400_v10 }
  0x25   : > { %506 = vrot.lane.b32.xlu0 %v386_v5, %s1816_s18 }
  0x26   : > { %728 = vrot.lane.b32.xlu1 %v385_v4, %s1817_s19  ;;  %616 = vrot.lane.b32.xlu2 %v385_v4, %s1818_s20  ;;  %v392_v8 = vld.sshfl [vmem:[#allocation1] sm:$0xff pattern:$0x75316420] }
  0x2d   : > { %618 = vrot.lane.b32.xlu0 %v386_v5, %s1818_s20 }
  0x2e   : > { %508 = vrot.lane.b32.xlu1 %v392_v8, %s1816_s18  ;;  %612 = vrot.lane.b32.xlu2 %v383_v6, %s1818_s20  ;;  %s362_s18 = sadd.s32 %s1723_s17, %s2091_s28 }
  0x35   : > { %614 = vrot.lane.b32.xlu0 %v384_v7, %s1818_s20 }
  0x36   : > { %620 = vrot.lane.b32.xlu1 %v392_v8, %s1818_s20  ;;  %730 = vrot.lane.b32.xlu2 %v386_v5, %s1817_s19 }
  0x3d   : > { %732 = vrot.lane.b32.xlu0 %v392_v8, %s1817_s19 }
  0x3e   : > { %724 = vrot.lane.b32.xlu1 %v383_v6, %s1817_s19  ;;  %726 = vrot.lane.b32.xlu2 %v384_v7, %s1817_s19  ;;  %s1637_s19 = sshll.u32 %s362_s18, 1 }
  0x45   : > { %840 = vrot.lane.b32.xlu0 %v385_v4, %s1819_s29 }
  0x46   : > { %842 = vrot.lane.b32.xlu1 %v386_v5, %s1819_s29  ;;  %844 = vrot.lane.b32.xlu2 %v392_v8, %s1819_s29 }
  0x4d   : > { %836 = vrot.lane.b32.xlu0 %v383_v6, %s1819_s29 }
  0x4e   : > { %838 = vrot.lane.b32.xlu1 %v384_v7, %s1819_s29  ;;  %952 = vrot.lane.b32.xlu2 %v385_v4, %s1820_s30  ;;  %s364_s29 = scalar_lea.vmem %s2074_s5, %s1637_s19 }
  0x55   : > { %954 = vrot.lane.b32.xlu0 %v386_v5, %s1820_s30 }
  0x56   : > { %956 = vrot.lane.b32.xlu1 %v392_v8, %s1820_s30  ;;  %948 = vrot.lane.b32.xlu2 %v383_v6, %s1820_s30 }
  0x5d   : > { %950 = vrot.lane.b32.xlu0 %v384_v7, %s1820_s30  ;;  %s1724_s30 = smul.u32 3, %s2087_s22 }
  0x5e   : > { %1064 = vrot.lane.b32.xlu1 %v385_v4, %s1821_s7  ;;  %1066 = vrot.lane.b32.xlu2 %v386_v5, %s1821_s7 }
  0x65   : > { %1068 = vrot.lane.b32.xlu0 %v392_v8, %s1821_s7 }
  0x66   : > { %1060 = vrot.lane.b32.xlu1 %v383_v6, %s1821_s7  ;;  %1062 = vrot.lane.b32.xlu2 %v384_v7, %s1821_s7  ;;  %s371_s7 = sadd.s32 %s1724_s30, %s2093_s21 }
  0x6d   : > { %1176 = vrot.lane.b32.xlu0 %v385_v4, %s1822_s8 }
  0x6e   : > { %1178 = vrot.lane.b32.xlu1 %v386_v5, %s1822_s8  ;;  %1180 = vrot.lane.b32.xlu2 %v392_v8, %s1822_s8 }
  0x75   : > { %1172 = vrot.lane.b32.xlu0 %v383_v6, %s1822_s8 }
  0x76   : > { %1174 = vrot.lane.b32.xlu1 %v384_v7, %s1822_s8  ;;  %1288 = vrot.lane.b32.xlu2 %v385_v4, %s1823_s9  ;;  %s1638_s8 = sshll.u32 %s371_s7, 1 }
  0x77   : > { %s373_s11 = scalar_lea.vmem %s2075_s6, %s1638_s8 }
  0x78   : > { %v503_v9 = vpop.permute.xlu2 %502 }
  0x7d   : > { %1290 = vrot.lane.b32.xlu0 %v386_v5, %s1823_s9 }
  0x7e   : > { %1292 = vrot.lane.b32.xlu1 %v392_v8, %s1823_s9  ;;  %1284 = vrot.lane.b32.xlu2 %v383_v6, %s1823_s9 }
  0x80   : > { %v617_v11 = vpop.permute.xlu2 %616 }
  0x85   : > { %1286 = vrot.lane.b32.xlu0 %v384_v7, %s1823_s9 }
  0x86   : > { %396 = vperm.xlu1 %1774, %v393_v30  }
  0x88   : > { %v613_v12 = vpop.permute.xlu2 %612 }
  0x8f   : > { %v505_v13 = vpop.permute.xlu0 %504 }
  0x90   : > { %v501_v14 = vpop.permute.xlu1 %500  ;;  %v512_v15 = vsel %vm510_vm2, %v503_v9, %v505_v13  ;;  %v731_v18 = vpop.permute.xlu2 %730 }
  0x91   : > { %1650 = vmatpush.msk.msrb.mxu1 %vm405_vm0, %v512_v15  ;;  %v511_v16 = vsel %vm510_vm2, %v501_v14, %v503_v9 }
  0x92   : > { %1648 = vmatpush.msk.msrb.mxu0 %vm405_vm0, %v511_v16  ;;  %1651 = vmatmul.msk.f32.vlgmr.msrb.gmra.mxu1 %vm401_vm1, %v1647_v17 }
  0x93   : > { %1649 = vmatmul.msk.f32.vlgmr.msrb.gmra.mxu0 %vm401_vm1, %v1647_v17 }
  0x97   : > { %v507_v19 = vpop.permute.xlu0 %506 }
  0x98   : > { %v729_v20 = vpop.permute.xlu1 %728  ;;  %v513_v21 = vsel %vm510_vm2, %v505_v13, %v507_v19  ;;  %v727_v22 = vpop.permute.xlu2 %726 }
  0x99   : > { %1652 = vmatpush.msk.msrb.mxu2 %vm405_vm0, %v513_v21  ;;  %v737_v27 = vsel %vm734_vm4, %v729_v20, %v731_v18  ;;  %v736_v36 = vsel %vm734_vm4, %v727_v22, %v729_v20  ;;  %v1710_v20 = vld [vmem:[%s2071_s2 + $0x10] sm:$0x3] }
  0x9a   : > { %1653 = vmatmul.msk.f32.vlgmr.msrb.gmra.mxu2 %vm401_vm1, %v1647_v17 }
  0x9f   : > { %v619_v23 = vpop.permute.xlu0 %618  ;;  %v431_v30 = vpop.f32.mrf.mxu0 }
  0xa0   : > { %v625_v24 = vsel %vm622_vm3, %v617_v11, %v619_v23  ;;  %v509_v25 = vpop.permute.xlu1 %508  ;;  %v845_v31 = vpop.permute.xlu2 %844 }
  0xa1   : > { %v514_v28 = vsel %vm510_vm2, %v507_v19, %v509_v25  ;;  %1661 = vmatpush.msk.msra.mxu2 %vm405_vm0, %v625_v24 }
  0xa2   : > { %1654 = vmatpush.msk.msrb.mxu3 %vm405_vm0, %v514_v28  ;;  %1662 = vmatmul.msk.f32.vlgmr.msra.gmra.mxu2 %vm401_vm1, %v1656_v26 }
  0xa3   : > { %1670 = vmatpush.msk.msrb.mxu2 %vm405_vm0, %v737_v27  ;;  %1655 = vmatmul.msk.f32.vlgmr.msrb.gmra.mxu3 %vm401_vm1, %v1647_v17  ;;  %v471_v28 = vpop.f32.mrf.mxu2 }
  0xa4   : > { %v491_v29 = vpop.f32.mrf.mxu3 }
  0xa7   : > { %v615_v32 = vpop.permute.xlu0 %614 }
  0xa8   : > { %v623_v33 = vsel %vm622_vm3, %v613_v12, %v615_v32  ;;  %v624_v34 = vsel %vm622_vm3, %v615_v32, %v617_v11  ;;  %v621_v35 = vpop.permute.xlu1 %620  ;;  %v953_v42 = vpop.permute.xlu2 %952  ;;  %v1701_v11 = vld [vmem:[%s2071_s2 + $0xe] sm:$0x3] }
  0xa9   : > { %v626_v37 = vsel %vm622_vm3, %v619_v23, %v621_v35  ;;  %1657 = vmatpush.msk.msra.mxu0 %vm405_vm0, %v623_v33  ;;  %1659 = vmatpush.msk.msra.mxu1 %vm405_vm0, %v624_v34 }
  0xaa   : > { %1663 = vmatpush.msk.msra.mxu3 %vm405_vm0, %v626_v37  ;;  %1658 = vmatmul.msk.f32.vlgmr.msra.gmra.mxu0 %vm401_vm1, %v1656_v26 }
  0xab   : > { %1668 = vmatpush.msk.msrb.mxu1 %vm405_vm0, %v736_v36  ;;  %1664 = vmatmul.msk.f32.vlgmr.msra.gmra.mxu3 %vm401_vm1, %v1656_v26 }
  0xac   : > { %1660 = vmatmul.msk.f32.vlgmr.msra.gmra.mxu1 %vm401_vm1, %v1656_v26  ;;  %1671 = vmatmul.msk.f32.vlgmr.msrb.gmra.mxu2 %vm401_vm1, %v1665_v38 }
  0xaf   : > { %v733_v39 = vpop.permute.xlu0 %732 }
  0xb0   : > { %v738_v40 = vsel %vm734_vm4, %v731_v18, %v733_v39  ;;  %v725_v41 = vpop.permute.xlu1 %724  ;;  %v949_v49 = vpop.permute.xlu2 %948 }
  0xb1   : > { %v735_v43 = vsel %vm734_vm4, %v725_v41, %v727_v22  ;;  %1672 = vmatpush.msk.msrb.mxu3 %vm405_vm0, %v738_v40 }
  0xb2   : > { %1666 = vmatpush.msk.msrb.mxu0 %vm405_vm0, %v735_v43 }
  0xb3   : > { %1673 = vmatmul.msk.f32.vlgmr.msrb.gmra.mxu3 %vm401_vm1, %v1665_v38  ;;  %1667 = vmatmul.msk.f32.vlgmr.msrb.gmra.mxu0 %vm401_vm1, %v1665_v38 }
  0xb4   : > { %1669 = vmatmul.msk.f32.vlgmr.msrb.gmra.mxu1 %vm401_vm1, %v1665_v38 }
  0xb7   : > { %v841_v44 = vpop.permute.xlu0 %840 }
  0xb8   : > { %v843_v45 = vpop.permute.xlu1 %842  ;;  %v1067_v54 = vpop.permute.xlu2 %1066 }
  0xb9   : > { %v849_v47 = vsel %vm846_vm5, %v841_v44, %v843_v45  ;;  %v850_v48 = vsel %vm846_vm5, %v843_v45, %v845_v31  ;;  %v451_v31 = vpop.f32.mrf.mxu1 }
  0xba   : > { %1679 = vmatpush.msk.msra.mxu2 %vm405_vm0, %v849_v47  ;;  %1681 = vmatpush.msk.msra.mxu3 %vm405_vm0, %v850_v48 }
  0xbb   : > { %1680 = vmatmul.msk.f32.vlgmr.msra.gmra.mxu2 %vm401_vm1, %v1674_v46  ;;  %1682 = vmatmul.msk.f32.vlgmr.msra.gmra.mxu3 %vm401_vm1, %v1674_v46 }
  0xbf   : > { %v837_v50 = vpop.permute.xlu0 %836 }
  0xc0   : > { %v839_v51 = vpop.permute.xlu1 %838  ;;  %v1063_v60 = vpop.permute.xlu2 %1062 }
  0xc1   : > { %v847_v52 = vsel %vm846_vm5, %v837_v50, %v839_v51  ;;  %v848_v53 = vsel %vm846_vm5, %v839_v51, %v841_v44 }
  0xc2   : > { %1675 = vmatpush.msk.msra.mxu0 %vm405_vm0, %v847_v52  ;;  %1677 = vmatpush.msk.msra.mxu1 %vm405_vm0, %v848_v53 }
  0xc3   : > { %1676 = vmatmul.msk.f32.vlgmr.msra.gmra.mxu0 %vm401_vm1, %v1674_v46  ;;  %1678 = vmatmul.msk.f32.vlgmr.msra.gmra.mxu1 %vm401_vm1, %v1674_v46 }
  0xc7   : > { %v955_v55 = vpop.permute.xlu0 %954 }
  0xc8   : > { %v961_v57 = vsel %vm958_vm6, %v953_v42, %v955_v55  ;;  %v957_v58 = vpop.permute.xlu1 %956  ;;  %v1181_v8 = vpop.permute.xlu2 %1180 }
  0xc9   : > { %v962_v59 = vsel %vm958_vm6, %v955_v55, %v957_v58  ;;  %1688 = vmatpush.msk.msrb.mxu2 %vm405_vm0, %v961_v57 }
  0xca   : > { %1690 = vmatpush.msk.msrb.mxu3 %vm405_vm0, %v962_v59  ;;  %1689 = vmatmul.msk.f32.vlgmr.msrb.gmra.mxu2 %vm401_vm1, %v1683_v56 }
  0xcb   : > { %1691 = vmatmul.msk.f32.vlgmr.msrb.gmra.mxu3 %vm401_vm1, %v1683_v56 }
  0xcf   : > { %v951_v61 = vpop.permute.xlu0 %950 }
  0xd0   : > { %v959_v62 = vsel %vm958_vm6, %v949_v49, %v951_v61  ;;  %v960_v63 = vsel %vm958_vm6, %v951_v61, %v953_v42  ;;  %v1065_v0 = vpop.permute.xlu1 %1064  ;;  %v1289_v18 = vpop.permute.xlu2 %1288 }
  0xd1   : > { %v1073_v2 = vsel %vm1070_vm7, %v1065_v0, %v1067_v54  ;;  %1684 = vmatpush.msk.msrb.mxu0 %vm405_vm0, %v959_v62  ;;  %1686 = vmatpush.msk.msrb.mxu1 %vm405_vm0, %v960_v63  ;;  %v1072_v3 = vsel %vm1070_vm7, %v1063_v60, %v1065_v0 }
  0xd2   : > { %1697 = vmatpush.msk.msra.mxu2 %vm405_vm0, %v1073_v2  ;;  %1685 = vmatmul.msk.f32.vlgmr.msrb.gmra.mxu0 %vm401_vm1, %v1683_v56 }
  0xd3   : > { %1687 = vmatmul.msk.f32.vlgmr.msrb.gmra.mxu1 %vm401_vm1, %v1683_v56  ;;  %1698 = vmatmul.msk.f32.vlgmr.msra.gmra.mxu2 %vm401_vm1, %v1692_v1 }
  0xd4   : > { %1695 = vmatpush.msk.msra.mxu1 %vm405_vm0, %v1072_v3 }
  0xd7   : > { %v1069_v4 = vpop.permute.xlu0 %1068 }
  0xd8   : > { %v1074_v5 = vsel %vm1070_vm7, %v1067_v54, %v1069_v4  ;;  %v1061_v6 = vpop.permute.xlu1 %1060  ;;  %v1285_v24 = vpop.permute.xlu2 %1284 }
  0xd9   : > { %v1071_v7 = vsel %vm1070_vm7, %v1061_v6, %v1063_v60  ;;  %1699 = vmatpush.msk.msra.mxu3 %vm405_vm0, %v1074_v5 }
  0xda   : > { %1693 = vmatpush.msk.msra.mxu0 %vm405_vm0, %v1071_v7  ;;  %1700 = vmatmul.msk.f32.vlgmr.msra.gmra.mxu3 %vm401_vm1, %v1692_v1 }
  0xdb   : > { %1694 = vmatmul.msk.f32.vlgmr.msra.gmra.mxu0 %vm401_vm1, %v1692_v1  ;;  %1696 = vmatmul.msk.f32.vlgmr.msra.gmra.mxu1 %vm401_vm1, %v1692_v1 }
  0xdf   : > { %v1177_v9 = vpop.permute.xlu0 %1176 }
  0xe0   : > { %v1179_v10 = vpop.permute.xlu1 %1178 }
  0xe1   : > { %v1185_v12 = vsel %vm1182_vm8, %v1177_v9, %v1179_v10  ;;  %v1186_v13 = vsel %vm1182_vm8, %v1179_v10, %v1181_v8 }
  0xe2   : > { %1706 = vmatpush.msk.msrb.mxu2 %vm405_vm0, %v1185_v12  ;;  %1708 = vmatpush.msk.msrb.mxu3 %vm405_vm0, %v1186_v13 }
  0xe3   : > { %1707 = vmatmul.msk.f32.vlgmr.msrb.gmra.mxu2 %vm401_vm1, %v1701_v11  ;;  %1709 = vmatmul.msk.f32.vlgmr.msrb.gmra.mxu3 %vm401_vm1, %v1701_v11 }
  0xe7   : > { %v1173_v14 = vpop.permute.xlu0 %1172 }
  0xe8   : > { %v1175_v15 = vpop.permute.xlu1 %1174 }
  0xe9   : > { %v1183_v16 = vsel %vm1182_vm8, %v1173_v14, %v1175_v15  ;;  %v1184_v17 = vsel %vm1182_vm8, %v1175_v15, %v1177_v9 }
  0xea   : > { %1702 = vmatpush.msk.msrb.mxu0 %vm405_vm0, %v1183_v16  ;;  %1704 = vmatpush.msk.msrb.mxu1 %vm405_vm0, %v1184_v17 }
  0xeb   : > { %1703 = vmatmul.msk.f32.vlgmr.msrb.gmra.mxu0 %vm401_vm1, %v1701_v11  ;;  %1705 = vmatmul.msk.f32.vlgmr.msrb.gmra.mxu1 %vm401_vm1, %v1701_v11 }
  0xef   : > { %v1291_v19 = vpop.permute.xlu0 %1290 }
  0xf0   : > { %v1297_v21 = vsel %vm1294_vm9, %v1289_v18, %v1291_v19  ;;  %v1293_v22 = vpop.permute.xlu1 %1292 }
  0xf1   : > { %v1298_v23 = vsel %vm1294_vm9, %v1291_v19, %v1293_v22  ;;  %1715 = vmatpush.msk.msra.mxu2 %vm405_vm0, %v1297_v21 }
  0xf2   : > { %1717 = vmatpush.msk.msra.mxu3 %vm405_vm0, %v1298_v23  ;;  %1716 = vmatmul.msk.f32.vlgmr.msra.gmra.mxu2 %vm401_vm1, %v1710_v20 }
  0xf3   : > { %1718 = vmatmul.msk.f32.vlgmr.msra.gmra.mxu3 %vm401_vm1, %v1710_v20 }
  0xf7   : > { %v1287_v25 = vpop.permute.xlu0 %1286 }
  0xf8   : > { %v1295_v26 = vsel %vm1294_vm9, %v1285_v24, %v1287_v25  ;;  %v1296_v27 = vsel %vm1294_vm9, %v1287_v25, %v1289_v18  ;;  %v397_v49 = vpop.permute.xlu1 %396 }
  0xf9   : > { %1711 = vmatpush.msk.msra.mxu0 %vm405_vm0, %v1295_v26  ;;  %1713 = vmatpush.msk.msra.mxu1 %vm405_vm0, %v1296_v27  ;;  %v496_v53 = vadd.f32 %v471_v28, %v397_v49  ;;  %v497_v54 = vadd.f32 %v491_v29, %v397_v49  ;;  %v494_v55 = vadd.f32 %v431_v30, %v397_v49  ;;  %v1420_v26 = vld [vmem:[%s354_s16] sm:$0xf] }
  0xfa   : > { %1712 = vmatmul.msk.f32.vlgmr.msra.gmra.mxu0 %vm401_vm1, %v1710_v20  ;;  %1714 = vmatmul.msk.f32.vlgmr.msra.gmra.mxu1 %vm401_vm1, %v1710_v20  ;;  %v495_v56 = vadd.f32 %v451_v31, %v397_v49  ;;  %vm1458_vm1 = vcmask 9216  }
 0x10f   : > { %v563_v35 = vpop.f32.mrf.mxu1 }
 0x110   : > { %v543_v34 = vpop.f32.mrf.mxu0  ;;  %v607_v60 = vadd.f32 %v563_v35, %v495_v56 }
 0x111   : > { %v606_v59 = vadd.f32 %v543_v34, %v494_v55 }
 0x11d   : > { %v583_v32 = vpop.f32.mrf.mxu2 }
 0x11e   : > { %v608_v57 = vadd.f32 %v583_v32, %v496_v53 }
 0x125   : > { %v695_v36 = vpop.f32.mrf.mxu2 }
 0x126   : > { %v603_v33 = vpop.f32.mrf.mxu3  ;;  %v720_v63 = vadd.f32 %v695_v36, %v608_v57 }
 0x127   : > { %v655_v38 = vpop.f32.mrf.mxu0  ;;  %v609_v58 = vadd.f32 %v603_v33, %v497_v54  ;;  %v1424_v33 = vperm.slane %v1420_v26, 2 }
 0x128   : > { %v718_v3 = vadd.f32 %v655_v38, %v606_v59 }
 0x129   : > { %v675_v39 = vpop.f32.mrf.mxu1 }
 0x12a   : > { %v719_v4 = vadd.f32 %v675_v39, %v607_v60 }
 0x12e   : > { %v715_v37 = vpop.f32.mrf.mxu3 }
 0x12f   : > { %v807_v40 = vpop.f32.mrf.mxu2  ;;  %v721_v0 = vadd.f32 %v715_v37, %v609_v58  ;;  %v1425_v37 = vperm.slane %v1420_v26, 3 }
 0x130   : > { %v767_v42 = vpop.f32.mrf.mxu0  ;;  %v832_v5 = vadd.f32 %v807_v40, %v720_v63 }
 0x131   : > { %v787_v43 = vpop.f32.mrf.mxu1  ;;  %v830_v7 = vadd.f32 %v767_v42, %v718_v3  ;;  %v1422_v42 = vperm.slane %v1420_v26, 0 }
 0x132   : > { %v831_v8 = vadd.f32 %v787_v43, %v719_v4  ;;  %v1423_v43 = vperm.slane %v1420_v26, 1 }
 0x136   : > { %v827_v41 = vpop.f32.mrf.mxu3 }
 0x137   : > { %v833_v6 = vadd.f32 %v827_v41, %v721_v0 }
 0x13e   : > { %v919_v44 = vpop.f32.mrf.mxu2  ;;  %v939_v45 = vpop.f32.mrf.mxu3 }
 0x13f   : > { %v944_v10 = vadd.f32 %v919_v44, %v832_v5  ;;  %v945_v12 = vadd.f32 %v939_v45, %v833_v6 }
 0x140   : > { %v879_v46 = vpop.f32.mrf.mxu0  ;;  %v899_v47 = vpop.f32.mrf.mxu1 }
 0x141   : > { %v942_v15 = vadd.f32 %v879_v46, %v830_v7  ;;  %v943_v16 = vadd.f32 %v899_v47, %v831_v8 }
 0x14d   : > { %v1031_v48 = vpop.f32.mrf.mxu2 }
 0x14e   : > { %v1051_v50 = vpop.f32.mrf.mxu3  ;;  %v1056_v17 = vadd.f32 %v1031_v48, %v944_v10 }
 0x14f   : > { %v991_v51 = vpop.f32.mrf.mxu0  ;;  %v1057_v18 = vadd.f32 %v1051_v50, %v945_v12 }
 0x150   : > { %v1011_v52 = vpop.f32.mrf.mxu1  ;;  %v1054_v19 = vadd.f32 %v991_v51, %v942_v15 }
 0x151   : > { %v1055_v20 = vadd.f32 %v1011_v52, %v943_v16 }
 0x156   : > { %v1143_v62 = vpop.f32.mrf.mxu2 }
 0x157   : > { %v1168_v21 = vadd.f32 %v1143_v62, %v1056_v17 }
 0x158   : > { %v1103_v1 = vpop.f32.mrf.mxu0  ;;  %v1123_v2 = vpop.f32.mrf.mxu1 }
 0x159   : > { %v1166_v23 = vadd.f32 %v1103_v1, %v1054_v19  ;;  %v1167_v24 = vadd.f32 %v1123_v2, %v1055_v20 }
 0x15d   : > { %v1163_v61 = vpop.f32.mrf.mxu3 }
 0x15e   : > { %v1169_v22 = vadd.f32 %v1163_v61, %v1057_v18 }
 0x166   : > { %v1255_v9 = vpop.f32.mrf.mxu2  ;;  %v1275_v11 = vpop.f32.mrf.mxu3 }
 0x167   : > { %v1280_v25 = vadd.f32 %v1255_v9, %v1168_v21  ;;  %v1281_v27 = vadd.f32 %v1275_v11, %v1169_v22 }
 0x168   : > { %v1215_v13 = vpop.f32.mrf.mxu0  ;;  %v1235_v14 = vpop.f32.mrf.mxu1 }
 0x169   : > { %v1278_v29 = vadd.f32 %v1215_v13, %v1166_v23  ;;  %v1279_v30 = vadd.f32 %v1235_v14, %v1167_v24 }
 0x175   : > { %v1367_v28 = vpop.f32.mrf.mxu2 }
 0x176   : > { %v1392_v31 = vadd.f32 %v1367_v28, %v1280_v25  ;;  %v1387_v32 = vpop.f32.mrf.mxu3 }
 0x177   : > { %v1393_v34 = vadd.f32 %v1387_v32, %v1281_v27  ;;  %v1327_v35 = vpop.f32.mrf.mxu0  ;;  %v1347_v36 = vpop.f32.mrf.mxu1 }
 0x178   : > { %vm1396_vm10 = vcmp.gt.f32.partialorder %v1392_v31, 0.0  ;;  %v1400_v38 = vmul.f32 0.01, %v1392_v31  ;;  %v1390_v39 = vadd.f32 %v1327_v35, %v1278_v29  ;;  %v1391_v40 = vadd.f32 %v1347_v36, %v1279_v30 }
 0x179   : > { %vm1397_vm11 = vcmp.gt.f32.partialorder %v1393_v34, 0.0  ;;  %v1401_v41 = vmul.f32 0.01, %v1393_v34 }
 0x17a   : > { %v1404_v44 = vsel %vm1396_vm10, %v1392_v31, %v1400_v38  ;;  %vm1394_vm12 = vcmp.gt.f32.partialorder %v1390_v39, 0.0  ;;  %v1398_v45 = vmul.f32 0.01, %v1390_v39  ;;  %vm1395_vm13 = vcmp.gt.f32.partialorder %v1391_v40, 0.0 }
 0x17b   : > { %v1432_v46 = vmul.f32 %v1424_v33, %v1404_v44  ;;  %v1405_v47 = vsel %vm1397_vm11, %v1393_v34, %v1401_v41  ;;  %v1399_v48 = vmul.f32 0.01, %v1391_v40  ;;  %v1411_v49 = vrot.slane %v1404_v44, 4 }
 0x17c   : > { %v1412_v50 = vrot.slane %v1405_v47, 2  ;;  %v1402_v51 = vsel %vm1394_vm12, %v1390_v39, %v1398_v45  ;;  %v1433_v56 = vmul.f32 %v1425_v37, %v1405_v47 }
 0x17d   : > { %v1430_v52 = vmul.f32 %v1422_v42, %v1402_v51  ;;  %v1403_v53 = vsel %vm1395_vm13, %v1391_v40, %v1399_v48  ;;  %v1445_v59 = vmul.f32 %v1432_v46, %v1432_v46  ;;  %v1437_v3 = vsel %vm1413_vm15, %v1432_v46, 0.0 }
 0x17e   : > { %v1410_v54 = vrot.slane %v1403_v53, 6  ;;  %v1431_v55 = vmul.f32 %v1423_v43, %v1403_v53  ;;  %v1416_v60 = vsel %vm1415_vm14, %v1411_v49, %v1412_v50  ;;  %v1446_v4 = vmul.f32 %v1433_v56, %v1433_v56 }
 0x17f   : > { %v1443_v57 = vmul.f32 %v1430_v52, %v1430_v52  ;;  %v1434_v58 = vsel %vm1413_vm15, %v1430_v52, 0.0  ;;  %v1439_v8 = vsel %vm1413_vm15, %v1433_v56, 0.0  ;;  %v1450_v9 = vsel %vm1413_vm15, %v1445_v59, 0.0 }
 0x180   : > { %v1414_v61 = vsel %vm1413_vm15, %v1402_v51, %v1410_v54  ;;  %v1444_v62 = vmul.f32 %v1431_v55, %v1431_v55  ;;  %v1435_v63 = vsel %vm1413_vm15, %v1431_v55, 0.0  ;;  %v1452_v12 = vsel %vm1413_vm15, %v1446_v4, 0.0 }
 0x181   : > { %v1417_v0 = vsel %vm405_vm0, %v1414_v61, %v1416_v60  ;;  %v1436_v1 = vadd.f32 %v1435_v63, %v1434_v58  ;;  %v1447_v2 = vsel %vm1413_vm15, %v1443_v57, 0.0  ;;  %vm1456_vm0 = vcmask 7168  }
 0x182   : > { %1419 = vst [vmem:[%s364_s29] sm:$0xff] %v1417_v0  ;;  %v1448_v5 = vsel %vm1413_vm15, %v1444_v62, 0.0 }
 0x183   : > { %v1438_v6 = vadd.f32 %v1437_v3, %v1436_v1  ;;  %v1449_v7 = vadd.f32 %v1448_v5, %v1447_v2 }
 0x185   : > { %v1440_v10 = vadd.f32 %v1439_v8, %v1438_v6  ;;  %v1451_v11 = vadd.f32 %v1450_v9, %v1449_v7 }
 0x187   : > { %1441 = vadd.xlane.f32.xlu2 %v1440_v10  ;;  %v1453_v13 = vadd.f32 %v1452_v12, %v1451_v11 }
 0x189   : > { %1454 = vadd.xlane.f32.xlu0 %v1453_v13 }
 0x1fa   : > { %v1442_v14 = vpop.xlane.xlu2 %1441 }
 0x1fc   : > { %v1455_v15 = vpop.xlane.xlu0 %1454 }
 0x1fd   : > { %v1457_v16 = vsel %vm1456_vm0, %v1442_v14, %v1455_v15 }
 0x1fe   : > { %1459 = vst.msk [vmem:[%s373_s11] sm:$0x3] %vm1458_vm1, %v1457_v16 }
 0x1ff PF: > { %s17_s25 = sadd.s32 1, %s1814_s25   ;;  %s2076_s21 = smov %s1806_s23 }
 0x200   : > { %p14_p10 = scmp.ge.s32.totalorder %s17_s25, 8   ;;  %s2077_s22 = smov %s1810_s24 }
 0x201   : > { %s2078_s23 = smov %s2081_s26  ;;  %s2079_s24 = smov %s2085_s27 }
 0x202   :  { %16 = sbr.rel (!%p14_p10) target bundleno = 3 (0x3), region = 98 }

// kernel: run.8
= control target key start
LH: loop header
LB: loop body
LE: loop exit
PB: predicated region body
PF: predicated region fallthrough
CT: control target
= control target key end

     0   :  { %s1852_s21 = smov 0   ;;  %s1854_s22 = smov 0   ;;  %s2060_s0 = inlined_call_operand.vmem [shape: f32[2,2,2048], index: 0, kind: input, shape index: {}, may-alias: {0,1}]   ;;  %s2061_s1 = inlined_call_operand.vmem [shape: f32[2,2,2048], index: 1, kind: input, shape index: {}, may-alias: {0,1}]   ;;  %s2062_s2 = inlined_call_operand.vmem [shape: f32[9,2,2], index: 2, kind: input, shape index: {}]   ;;  %s2063_s3 = inlined_call_operand.vmem [shape: f32[2,1], index: 3, kind: input, shape index: {}]   ;;  %s2064_s4 = inlined_call_operand.vmem [shape: f32[1,1536], index: 4, kind: input, shape index: {}]   ;;  %s2065_s5 = inlined_call_operand.vmem [shape: f32[2,2,1536], index: 5, kind: output, shape index: {0}]   ;;  %s2066_s6 = inlined_call_operand.vmem [shape: f32[2,3,2,2], index: 6, kind: output, shape index: {1}]  }
   0x1   :  { %s1856_s23 = smov 0   ;;  %s1858_s24 = smov 0  }
   0x2   :  { %s1860_s25 = smov 0  }
   0x3 LB: > { %s26_s26 = sadd.s32 1, %s1798_s23  ;;  %s29_s27 = sadd.s32 1, %s1802_s24  ;;  %s1806_s25 = sphi %s1860_s25, %s17_s25   ;;  %s1802_s24 = sphi %s1858_s24, %s2070_s24   ;;  %s1798_s23 = sphi %s1856_s23, %s2069_s23   ;;  %s1794_s22 = sphi %s1854_s22, %s2068_s22   ;;  %s1790_s21 = sphi %s1852_s21, %s2067_s21  }
   0x4   : > { %p27_p0 = scmp.ge.s32.totalorder %s26_s26, 3  ;;  %p1620_p1 = scmp.ge.s32.totalorder %s1806_s25, 1 }
   0x5   : > { %p269_p2 = scmp.lt.s32.totalorder %s1806_s25, 7 }
   0x6   : > { %s2072_s26 = smov (%p27_p0, %s26_s26), 0  ;;  %s2074_s27 = smov (!%p27_p0, %s29_s27), %s1802_s24 }
   0x7   : > { %p270_p3 = pnand %p1620_p1, %p269_p2  ;;  %p31_p4 = scmp.ge.s32.totalorder %s2074_s27, 2 }
   0x8   : > { %s1885_s28 = sshll.u32 (!%p270_p3), %s1790_s21, 2  ;;  %p330_p5 = scmp.lt.s32.totalorder (!%p270_p3), %s1794_s22, 1 }
   0x9   : > { %s2076_s27 = smov (%p31_p4, %s2074_s27), 0  ;;  %273 = sbr.rel (%p270_p3) target bundleno = 512 (0x200), region = 40 }
   0xa   : > { %p332_p6 = scmp.lt.s32.totalorder (!%p270_p3), %s1885_s28, 15  ;;  %s1714_s9 = sadd.s32 (!%p270_p3), 4, %s1885_s28 }
   0xb   : > { %p343_p7 = scmp.lt.s32.totalorder (!%p270_p3), %s1714_s9, 15  ;;  %s1808_s18 = smov (!%p270_p3), 127  }
   0xc   : > { %s1809_s19 = smov (!%p270_p3), 94   ;;  %s1810_s20 = smov (!%p270_p3), 126  }
   0xd   : > { %p352_p8 = scmp.lt.s32.totalorder (!%p270_p3), %s1885_s28, 11  ;;  %p368_p9 = scmp.lt.s32.totalorder (!%p270_p3), %s1790_s21, 2 }
   0xe   : > { %s2078_s22 = smov (!%p330_p5, %s1794_s22), 1  ;;  %s2080_s9 = smov (!%p343_p7, %s1714_s9), 15  ;;  %vm397_vm0 = vcmask 1041408   ;;  %v392_v8 = vld [vmem:[%s2062_s2] sm:$0x3]  ;;  %vm393_vm1 = vcmask 15360  }
   0xf   : > { %s333_s29 = scalar_select %p332_p6, %s1885_s28, 15  ;;  %vm502_vm2 = vcmask 1039360   ;;  %v1639_v15 = vld [vmem:[%s2062_s2 + $0x2] sm:$0x3]  ;;  %vm614_vm3 = vcmask 1031168   ;;  %vm726_vm4 = vcmask 769024  }
  0x10   : > { %s1622_s30 = sshll.u32 %s2078_s22, 4  ;;  %v1648_v25 = vld [vmem:[%s2062_s2 + $0x4] sm:$0x3]  ;;  %v1816_v27 = vmov 0   ;;  %v385_v28 = vld [vmem:[%s2063_s3] sm:$0x3] }
  0x11   : > { %s335_s7 = sadd.s32 %s1622_s30, %s333_s29  ;;  %s346_s13 = sadd.s32 %s1622_s30, %s2080_s9  ;;  %1766 = vset.pattern.permute.xlu1 %v1816_v27  ;;  %1767 = vset.pattern.permute.xlu0 %v1816_v27  ;;  %v1657_v36 = vld [vmem:[%s2062_s2 + $0x6] sm:$0x3]  ;;  %vm838_vm5 = vcmask 760832   ;;  %v1666_v44 = vld [vmem:[%s2062_s2 + $0x8] sm:$0x3]  ;;  %vm950_vm6 = vcmask 752640  }
  0x12   : > { %s1623_s8 = sshll.u32 %s335_s7, 1  ;;  %s1626_s14 = sshll.u32 %s346_s13, 1  ;;  %v1675_v55 = vld [vmem:[%s2062_s2 + $0xa] sm:$0x3]  ;;  %vm1062_vm7 = vcmask 490496   ;;  %vm1174_vm8 = vcmask 482304  }
  0x13   : > { %s337_s12 = scalar_lea.vmem %s2060_s0, %s1623_s8  ;;  %s348_s17 = scalar_lea.vmem %s2061_s1, %s1626_s14  ;;  %vm1286_vm9 = vcmask 474112   ;;  %vm1406_vm14 = vcmask 1045508   ;;  %vm1408_vm15 = vcmask 1043456  }
  0x14   : > { %v374_v0 = vld [vmem:[%s337_s12] sm:$0xff]  ;;  %s1811_s29 = smov 93   ;;  %s1812_s30 = smov 92  }
  0x15   : > { %377 = vst [vmem:[#allocation1] ss:$4 sm:$0xff] %v374_v0  ;;  %v375_v1 = vld [vmem:[%s348_s17] sm:$0xff]  ;;  %s1813_s7 = smov 60   ;;  %s1814_s8 = smov 59  }
  0x16   : > { %s1815_s9 = smov 58   ;;  %v1684_v0 = vld [vmem:[%s2062_s2 + $0xc] sm:$0x3]  ;;  %s2082_s28 = smov (!%p352_p8, %s1885_s28), 11 }
  0x17   : > { %s354_s16 = scalar_lea.vmem %s2064_s4, %s2082_s28  ;;  %s1715_s17 = smul.u32 12, %s2078_s22 }
  0x18   : > { %s2084_s21 = smov (!%p368_p9, %s1790_s21), 2 }
  0x1c   : > { %v380_v2 = vld.sshfl [vmem:[#allocation1 + $0x10] sm:$0xff pattern:$0x73625140]  ;;  %v378_v3 = vld.sshfl [vmem:[#allocation1] sm:$0xff pattern:$0x73625140] }
  0x1d   : > { %496 = vrot.lane.b32.xlu0 %v380_v2, %s1808_s18  ;;  %492 = vrot.lane.b32.xlu1 %v378_v3, %s1808_s18  ;;  %v379_v4 = vld.sshfl [vmem:[#allocation1 + $0x8] sm:$0xff pattern:$0x73625140]  ;;  %v381_v5 = vld.sshfl [vmem:[#allocation1 + $0x18] sm:$0xff pattern:$0x73625140] }
  0x1e   : > { %494 = vrot.lane.b32.xlu2 %v379_v4, %s1808_s18  ;;  %383 = vst [vmem:[#allocation1] ss:$4 sm:$0xff] %v375_v1  ;;  %1633 = vmatpush.msk.msra.mxu1 %vm397_vm0, %v379_v4 }
  0x1f   : > { %1631 = vmatpush.msk.msra.mxu0 %vm397_vm0, %v378_v3  ;;  %1635 = vmatpush.msk.msra.mxu2 %vm397_vm0, %v380_v2 }
  0x20   : > { %1637 = vmatpush.msk.msra.mxu3 %vm397_vm0, %v381_v5  ;;  %1636 = vmatmul.msk.f32.vlgmr.msra.gmra.mxu2 %vm393_vm1, %v392_v8 }
  0x21   : > { %1634 = vmatmul.msk.f32.vlgmr.msra.gmra.mxu1 %vm393_vm1, %v392_v8  ;;  %1638 = vmatmul.msk.f32.vlgmr.msra.gmra.mxu3 %vm393_vm1, %v392_v8 }
  0x22   : > { %1632 = vmatmul.msk.f32.vlgmr.msra.gmra.mxu0 %vm393_vm1, %v392_v8 }
  0x25   : > { %498 = vrot.lane.b32.xlu0 %v381_v5, %s1808_s18  ;;  %720 = vrot.lane.b32.xlu1 %v380_v2, %s1809_s19  ;;  %v384_v6 = vld.sshfl [vmem:[#allocation1] sm:$0xff pattern:$0x73625140] }
  0x26   : > { %608 = vrot.lane.b32.xlu2 %v380_v2, %s1810_s20 }
  0x2d   : > { %610 = vrot.lane.b32.xlu0 %v381_v5, %s1810_s20  ;;  %500 = vrot.lane.b32.xlu1 %v384_v6, %s1808_s18  ;;  %s362_s18 = sadd.s32 %s1715_s17, %s2082_s28 }
  0x2e   : > { %604 = vrot.lane.b32.xlu2 %v378_v3, %s1810_s20 }
  0x35   : > { %606 = vrot.lane.b32.xlu0 %v379_v4, %s1810_s20  ;;  %612 = vrot.lane.b32.xlu1 %v384_v6, %s1810_s20 }
  0x36   : > { %722 = vrot.lane.b32.xlu2 %v381_v5, %s1809_s19 }
  0x3d   : > { %724 = vrot.lane.b32.xlu0 %v384_v6, %s1809_s19  ;;  %716 = vrot.lane.b32.xlu1 %v378_v3, %s1809_s19 }
  0x3e   : > { %718 = vrot.lane.b32.xlu2 %v379_v4, %s1809_s19  ;;  %s1629_s19 = sshll.u32 %s362_s18, 1 }
  0x45   : > { %832 = vrot.lane.b32.xlu0 %v380_v2, %s1811_s29  ;;  %834 = vrot.lane.b32.xlu1 %v381_v5, %s1811_s29 }
  0x46   : > { %836 = vrot.lane.b32.xlu2 %v384_v6, %s1811_s29 }
  0x4d   : > { %828 = vrot.lane.b32.xlu0 %v378_v3, %s1811_s29  ;;  %830 = vrot.lane.b32.xlu1 %v379_v4, %s1811_s29  ;;  %s364_s29 = scalar_lea.vmem %s2065_s5, %s1629_s19 }
  0x4e   : > { %944 = vrot.lane.b32.xlu2 %v380_v2, %s1812_s30 }
  0x55   : > { %946 = vrot.lane.b32.xlu0 %v381_v5, %s1812_s30  ;;  %948 = vrot.lane.b32.xlu1 %v384_v6, %s1812_s30 }
  0x56   : > { %940 = vrot.lane.b32.xlu2 %v378_v3, %s1812_s30 }
  0x5d   : > { %942 = vrot.lane.b32.xlu0 %v379_v4, %s1812_s30  ;;  %1056 = vrot.lane.b32.xlu1 %v380_v2, %s1813_s7  ;;  %s1716_s30 = smul.u32 3, %s2078_s22 }
  0x5e   : > { %1058 = vrot.lane.b32.xlu2 %v381_v5, %s1813_s7 }
  0x65   : > { %1060 = vrot.lane.b32.xlu0 %v384_v6, %s1813_s7  ;;  %1052 = vrot.lane.b32.xlu1 %v378_v3, %s1813_s7 }
  0x66   : > { %1054 = vrot.lane.b32.xlu2 %v379_v4, %s1813_s7  ;;  %s371_s7 = sadd.s32 %s1716_s30, %s2084_s21 }
  0x6d   : > { %1168 = vrot.lane.b32.xlu0 %v380_v2, %s1814_s8  ;;  %1170 = vrot.lane.b32.xlu1 %v381_v5, %s1814_s8 }
  0x6e   : > { %1172 = vrot.lane.b32.xlu2 %v384_v6, %s1814_s8 }
  0x75   : > { %1164 = vrot.lane.b32.xlu0 %v378_v3, %s1814_s8  ;;  %1166 = vrot.lane.b32.xlu1 %v379_v4, %s1814_s8  ;;  %s1630_s8 = sshll.u32 %s371_s7, 1 }
  0x76   : > { %1280 = vrot.lane.b32.xlu2 %v380_v2, %s1815_s9  ;;  %s373_s11 = scalar_lea.vmem %s2066_s6, %s1630_s8 }
  0x78   : > { %v495_v7 = vpop.permute.xlu2 %494 }
  0x7d   : > { %1282 = vrot.lane.b32.xlu0 %v381_v5, %s1815_s9  ;;  %1284 = vrot.lane.b32.xlu1 %v384_v6, %s1815_s9 }
  0x7e   : > { %1276 = vrot.lane.b32.xlu2 %v378_v3, %s1815_s9 }
  0x80   : > { %v609_v9 = vpop.permute.xlu2 %608 }
  0x85   : > { %1278 = vrot.lane.b32.xlu0 %v379_v4, %s1815_s9  ;;  %388 = vperm.xlu1 %1766, %v385_v28  }
  0x88   : > { %v605_v10 = vpop.permute.xlu2 %604 }
  0x8f   : > { %v497_v11 = vpop.permute.xlu0 %496  ;;  %v493_v12 = vpop.permute.xlu1 %492 }
  0x90   : > { %v504_v13 = vsel %vm502_vm2, %v495_v7, %v497_v11  ;;  %v503_v14 = vsel %vm502_vm2, %v493_v12, %v495_v7  ;;  %v723_v16 = vpop.permute.xlu2 %722 }
  0x91   : > { %1642 = vmatpush.msk.msrb.mxu1 %vm397_vm0, %v504_v13  ;;  %1640 = vmatpush.msk.msrb.mxu0 %vm397_vm0, %v503_v14 }
  0x92   : > { %1643 = vmatmul.msk.f32.vlgmr.msrb.gmra.mxu1 %vm393_vm1, %v1639_v15  ;;  %1641 = vmatmul.msk.f32.vlgmr.msrb.gmra.mxu0 %vm393_vm1, %v1639_v15 }
  0x97   : > { %v499_v17 = vpop.permute.xlu0 %498  ;;  %v721_v18 = vpop.permute.xlu1 %720 }
  0x98   : > { %v505_v19 = vsel %vm502_vm2, %v497_v11, %v499_v17  ;;  %v719_v20 = vpop.permute.xlu2 %718  ;;  %v729_v26 = vsel %vm726_vm4, %v721_v18, %v723_v16 }
  0x99   : > { %1644 = vmatpush.msk.msrb.mxu2 %vm397_vm0, %v505_v19  ;;  %v728_v35 = vsel %vm726_vm4, %v719_v20, %v721_v18  ;;  %v1702_v19 = vld [vmem:[%s2062_s2 + $0x10] sm:$0x3] }
  0x9a   : > { %1645 = vmatmul.msk.f32.vlgmr.msrb.gmra.mxu2 %vm393_vm1, %v1639_v15 }
  0x9f   : > { %v611_v21 = vpop.permute.xlu0 %610  ;;  %v501_v22 = vpop.permute.xlu1 %500 }
  0xa0   : > { %v617_v23 = vsel %vm614_vm3, %v609_v9, %v611_v21  ;;  %v506_v24 = vsel %vm502_vm2, %v499_v17, %v501_v22  ;;  %v837_v29 = vpop.permute.xlu2 %836  ;;  %v423_v28 = vpop.f32.mrf.mxu0  ;;  %vm1450_vm2 = vcmask 9216  }
  0xa1   : > { %1646 = vmatpush.msk.msrb.mxu3 %vm397_vm0, %v506_v24  ;;  %1653 = vmatpush.msk.msra.mxu2 %vm397_vm0, %v617_v23 }
  0xa2   : > { %1647 = vmatmul.msk.f32.vlgmr.msrb.gmra.mxu3 %vm393_vm1, %v1639_v15  ;;  %1654 = vmatmul.msk.f32.vlgmr.msra.gmra.mxu2 %vm393_vm1, %v1648_v25 }
  0xa3   : > { %1662 = vmatpush.msk.msrb.mxu2 %vm397_vm0, %v729_v26  ;;  %v463_v26 = vpop.f32.mrf.mxu2 }
  0xa4   : > { %v483_v27 = vpop.f32.mrf.mxu3 }
  0xa7   : > { %v607_v30 = vpop.permute.xlu0 %606  ;;  %v613_v31 = vpop.permute.xlu1 %612 }
  0xa8   : > { %v615_v32 = vsel %vm614_vm3, %v605_v10, %v607_v30  ;;  %v616_v33 = vsel %vm614_vm3, %v607_v30, %v609_v9  ;;  %v618_v34 = vsel %vm614_vm3, %v611_v21, %v613_v31  ;;  %v945_v41 = vpop.permute.xlu2 %944  ;;  %v1693_v9 = vld [vmem:[%s2062_s2 + $0xe] sm:$0x3] }
  0xa9   : > { %1649 = vmatpush.msk.msra.mxu0 %vm397_vm0, %v615_v32  ;;  %1651 = vmatpush.msk.msra.mxu1 %vm397_vm0, %v616_v33 }
  0xaa   : > { %1655 = vmatpush.msk.msra.mxu3 %vm397_vm0, %v618_v34  ;;  %1650 = vmatmul.msk.f32.vlgmr.msra.gmra.mxu0 %vm393_vm1, %v1648_v25 }
  0xab   : > { %1660 = vmatpush.msk.msrb.mxu1 %vm397_vm0, %v728_v35  ;;  %1656 = vmatmul.msk.f32.vlgmr.msra.gmra.mxu3 %vm393_vm1, %v1648_v25 }
  0xac   : > { %1652 = vmatmul.msk.f32.vlgmr.msra.gmra.mxu1 %vm393_vm1, %v1648_v25  ;;  %1663 = vmatmul.msk.f32.vlgmr.msrb.gmra.mxu2 %vm393_vm1, %v1657_v36 }
  0xaf   : > { %v725_v37 = vpop.permute.xlu0 %724  ;;  %v717_v38 = vpop.permute.xlu1 %716 }
  0xb0   : > { %v730_v39 = vsel %vm726_vm4, %v723_v16, %v725_v37  ;;  %v727_v40 = vsel %vm726_vm4, %v717_v38, %v719_v20  ;;  %v941_v47 = vpop.permute.xlu2 %940 }
  0xb1   : > { %1664 = vmatpush.msk.msrb.mxu3 %vm397_vm0, %v730_v39  ;;  %1658 = vmatpush.msk.msrb.mxu0 %vm397_vm0, %v727_v40 }
  0xb2   : > { %1659 = vmatmul.msk.f32.vlgmr.msrb.gmra.mxu0 %vm393_vm1, %v1657_v36 }
  0xb3   : > { %1665 = vmatmul.msk.f32.vlgmr.msrb.gmra.mxu3 %vm393_vm1, %v1657_v36 }
  0xb4   : > { %1661 = vmatmul.msk.f32.vlgmr.msrb.gmra.mxu1 %vm393_vm1, %v1657_v36 }
  0xb7   : > { %v833_v42 = vpop.permute.xlu0 %832  ;;  %v835_v43 = vpop.permute.xlu1 %834 }
  0xb8   : > { %v841_v45 = vsel %vm838_vm5, %v833_v42, %v835_v43  ;;  %v842_v46 = vsel %vm838_vm5, %v835_v43, %v837_v29  ;;  %v1059_v52 = vpop.permute.xlu2 %1058  ;;  %v443_v29 = vpop.f32.mrf.mxu1 }
  0xb9   : > { %1671 = vmatpush.msk.msra.mxu2 %vm397_vm0, %v841_v45  ;;  %1673 = vmatpush.msk.msra.mxu3 %vm397_vm0, %v842_v46 }
  0xba   : > { %1672 = vmatmul.msk.f32.vlgmr.msra.gmra.mxu2 %vm393_vm1, %v1666_v44 }
  0xbb   : > { %1674 = vmatmul.msk.f32.vlgmr.msra.gmra.mxu3 %vm393_vm1, %v1666_v44 }
  0xbf   : > { %v829_v48 = vpop.permute.xlu0 %828  ;;  %v831_v49 = vpop.permute.xlu1 %830 }
  0xc0   : > { %v839_v50 = vsel %vm838_vm5, %v829_v48, %v831_v49  ;;  %v840_v51 = vsel %vm838_vm5, %v831_v49, %v833_v42  ;;  %v1055_v58 = vpop.permute.xlu2 %1054 }
  0xc1   : > { %1667 = vmatpush.msk.msra.mxu0 %vm397_vm0, %v839_v50  ;;  %1669 = vmatpush.msk.msra.mxu1 %vm397_vm0, %v840_v51 }
  0xc2   : > { %1668 = vmatmul.msk.f32.vlgmr.msra.gmra.mxu0 %vm393_vm1, %v1666_v44  ;;  %1670 = vmatmul.msk.f32.vlgmr.msra.gmra.mxu1 %vm393_vm1, %v1666_v44 }
  0xc7   : > { %v947_v53 = vpop.permute.xlu0 %946  ;;  %v949_v54 = vpop.permute.xlu1 %948 }
  0xc8   : > { %v953_v56 = vsel %vm950_vm6, %v945_v41, %v947_v53  ;;  %v954_v57 = vsel %vm950_vm6, %v947_v53, %v949_v54  ;;  %v1173_v6 = vpop.permute.xlu2 %1172 }
  0xc9   : > { %1680 = vmatpush.msk.msrb.mxu2 %vm397_vm0, %v953_v56  ;;  %1682 = vmatpush.msk.msrb.mxu3 %vm397_vm0, %v954_v57 }
  0xca   : > { %1681 = vmatmul.msk.f32.vlgmr.msrb.gmra.mxu2 %vm393_vm1, %v1675_v55  ;;  %1683 = vmatmul.msk.f32.vlgmr.msrb.gmra.mxu3 %vm393_vm1, %v1675_v55 }
  0xcf   : > { %v943_v59 = vpop.permute.xlu0 %942  ;;  %v1057_v60 = vpop.permute.xlu1 %1056 }
  0xd0   : > { %v951_v61 = vsel %vm950_vm6, %v941_v47, %v943_v59  ;;  %v952_v62 = vsel %vm950_vm6, %v943_v59, %v945_v41  ;;  %v1065_v63 = vsel %vm1062_vm7, %v1057_v60, %v1059_v52  ;;  %v1064_v1 = vsel %vm1062_vm7, %v1055_v58, %v1057_v60  ;;  %v1281_v16 = vpop.permute.xlu2 %1280 }
  0xd1   : > { %1676 = vmatpush.msk.msrb.mxu0 %vm397_vm0, %v951_v61  ;;  %1678 = vmatpush.msk.msrb.mxu1 %vm397_vm0, %v952_v62 }
  0xd2   : > { %1689 = vmatpush.msk.msra.mxu2 %vm397_vm0, %v1065_v63  ;;  %1677 = vmatmul.msk.f32.vlgmr.msrb.gmra.mxu0 %vm393_vm1, %v1675_v55 }
  0xd3   : > { %1679 = vmatmul.msk.f32.vlgmr.msrb.gmra.mxu1 %vm393_vm1, %v1675_v55  ;;  %1690 = vmatmul.msk.f32.vlgmr.msra.gmra.mxu2 %vm393_vm1, %v1684_v0 }
  0xd4   : > { %1687 = vmatpush.msk.msra.mxu1 %vm397_vm0, %v1064_v1 }
  0xd7   : > { %v1061_v2 = vpop.permute.xlu0 %1060  ;;  %v1053_v3 = vpop.permute.xlu1 %1052 }
  0xd8   : > { %v1066_v4 = vsel %vm1062_vm7, %v1059_v52, %v1061_v2  ;;  %v1063_v5 = vsel %vm1062_vm7, %v1053_v3, %v1055_v58  ;;  %v1277_v22 = vpop.permute.xlu2 %1276 }
  0xd9   : > { %1685 = vmatpush.msk.msra.mxu0 %vm397_vm0, %v1063_v5  ;;  %1691 = vmatpush.msk.msra.mxu3 %vm397_vm0, %v1066_v4 }
  0xda   : > { %1686 = vmatmul.msk.f32.vlgmr.msra.gmra.mxu0 %vm393_vm1, %v1684_v0  ;;  %1692 = vmatmul.msk.f32.vlgmr.msra.gmra.mxu3 %vm393_vm1, %v1684_v0 }
  0xdb   : > { %1688 = vmatmul.msk.f32.vlgmr.msra.gmra.mxu1 %vm393_vm1, %v1684_v0 }
  0xdf   : > { %v1169_v7 = vpop.permute.xlu0 %1168  ;;  %v1171_v8 = vpop.permute.xlu1 %1170 }
  0xe0   : > { %v1177_v10 = vsel %vm1174_vm8, %v1169_v7, %v1171_v8  ;;  %v1178_v11 = vsel %vm1174_vm8, %v1171_v8, %v1173_v6 }
  0xe1   : > { %1698 = vmatpush.msk.msrb.mxu2 %vm397_vm0, %v1177_v10  ;;  %1700 = vmatpush.msk.msrb.mxu3 %vm397_vm0, %v1178_v11 }
  0xe2   : > { %1699 = vmatmul.msk.f32.vlgmr.msrb.gmra.mxu2 %vm393_vm1, %v1693_v9  ;;  %1701 = vmatmul.msk.f32.vlgmr.msrb.gmra.mxu3 %vm393_vm1, %v1693_v9 }
  0xe7   : > { %v1165_v12 = vpop.permute.xlu0 %1164  ;;  %v1167_v13 = vpop.permute.xlu1 %1166 }
  0xe8   : > { %v1175_v14 = vsel %vm1174_vm8, %v1165_v12, %v1167_v13  ;;  %v1176_v15 = vsel %vm1174_vm8, %v1167_v13, %v1169_v7 }
  0xe9   : > { %1694 = vmatpush.msk.msrb.mxu0 %vm397_vm0, %v1175_v14  ;;  %1696 = vmatpush.msk.msrb.mxu1 %vm397_vm0, %v1176_v15 }
  0xea   : > { %1695 = vmatmul.msk.f32.vlgmr.msrb.gmra.mxu0 %vm393_vm1, %v1693_v9  ;;  %1697 = vmatmul.msk.f32.vlgmr.msrb.gmra.mxu1 %vm393_vm1, %v1693_v9 }
  0xef   : > { %v1283_v17 = vpop.permute.xlu0 %1282  ;;  %v1285_v18 = vpop.permute.xlu1 %1284 }
  0xf0   : > { %v1289_v20 = vsel %vm1286_vm9, %v1281_v16, %v1283_v17  ;;  %v1290_v21 = vsel %vm1286_vm9, %v1283_v17, %v1285_v18 }
  0xf1   : > { %1707 = vmatpush.msk.msra.mxu2 %vm397_vm0, %v1289_v20  ;;  %1709 = vmatpush.msk.msra.mxu3 %vm397_vm0, %v1290_v21 }
  0xf2   : > { %1708 = vmatmul.msk.f32.vlgmr.msra.gmra.mxu2 %vm393_vm1, %v1702_v19  ;;  %1710 = vmatmul.msk.f32.vlgmr.msra.gmra.mxu3 %vm393_vm1, %v1702_v19 }
  0xf7   : > { %v1279_v23 = vpop.permute.xlu0 %1278  ;;  %v389_v48 = vpop.permute.xlu1 %388 }
  0xf8   : > { %v1287_v24 = vsel %vm1286_vm9, %v1277_v22, %v1279_v23  ;;  %v1288_v25 = vsel %vm1286_vm9, %v1279_v23, %v1281_v16  ;;  %v488_v51 = vadd.f32 %v463_v26, %v389_v48  ;;  %v489_v52 = vadd.f32 %v483_v27, %v389_v48  ;;  %v1412_v23 = vld [vmem:[%s354_s16] sm:$0xf] }
  0xf9   : > { %1703 = vmatpush.msk.msra.mxu0 %vm397_vm0, %v1287_v24  ;;  %1705 = vmatpush.msk.msra.mxu1 %vm397_vm0, %v1288_v25  ;;  %v486_v53 = vadd.f32 %v423_v28, %v389_v48  ;;  %v487_v54 = vadd.f32 %v443_v29, %v389_v48 }
  0xfa   : > { %1704 = vmatmul.msk.f32.vlgmr.msra.gmra.mxu0 %vm393_vm1, %v1702_v19  ;;  %1706 = vmatmul.msk.f32.vlgmr.msra.gmra.mxu1 %vm393_vm1, %v1702_v19  ;;  %vm1448_vm1 = vcmask 7168  }
 0x10f   : > { %v535_v32 = vpop.f32.mrf.mxu0  ;;  %v555_v33 = vpop.f32.mrf.mxu1 }
 0x110   : > { %v598_v58 = vadd.f32 %v535_v32, %v486_v53  ;;  %v599_v59 = vadd.f32 %v555_v33, %v487_v54  ;;  %v1416_v32 = vperm.slane %v1412_v23, 2 }
 0x11d   : > { %v575_v30 = vpop.f32.mrf.mxu2 }
 0x11e   : > { %v600_v55 = vadd.f32 %v575_v30, %v488_v51 }
 0x125   : > { %v595_v31 = vpop.f32.mrf.mxu3  ;;  %v687_v34 = vpop.f32.mrf.mxu2 }
 0x126   : > { %v601_v56 = vadd.f32 %v595_v31, %v489_v52  ;;  %v712_v61 = vadd.f32 %v687_v34, %v600_v55 }
 0x127   : > { %v647_v36 = vpop.f32.mrf.mxu0 }
 0x128   : > { %v710_v1 = vadd.f32 %v647_v36, %v598_v58 }
 0x129   : > { %v667_v37 = vpop.f32.mrf.mxu1 }
 0x12a   : > { %v711_v2 = vadd.f32 %v667_v37, %v599_v59 }
 0x12e   : > { %v707_v35 = vpop.f32.mrf.mxu3 }
 0x12f   : > { %v799_v38 = vpop.f32.mrf.mxu2  ;;  %v759_v40 = vpop.f32.mrf.mxu0  ;;  %v713_v62 = vadd.f32 %v707_v35, %v601_v56 }
 0x130   : > { %v824_v3 = vadd.f32 %v799_v38, %v712_v61  ;;  %v822_v5 = vadd.f32 %v759_v40, %v710_v1 }
 0x131   : > { %v779_v41 = vpop.f32.mrf.mxu1 }
 0x132   : > { %v823_v6 = vadd.f32 %v779_v41, %v711_v2  ;;  %v1414_v41 = vperm.slane %v1412_v23, 0 }
 0x136   : > { %v819_v39 = vpop.f32.mrf.mxu3 }
 0x137   : > { %v825_v4 = vadd.f32 %v819_v39, %v713_v62 }
 0x13d   : > { %v911_v42 = vpop.f32.mrf.mxu2 }
 0x13e   : > { %v931_v43 = vpop.f32.mrf.mxu3  ;;  %v936_v9 = vadd.f32 %v911_v42, %v824_v3  ;;  %v1417_v42 = vperm.slane %v1412_v23, 3 }
 0x13f   : > { %v871_v44 = vpop.f32.mrf.mxu0  ;;  %v891_v45 = vpop.f32.mrf.mxu1  ;;  %v937_v10 = vadd.f32 %v931_v43, %v825_v4 }
 0x140   : > { %v934_v15 = vadd.f32 %v871_v44, %v822_v5  ;;  %v935_v16 = vadd.f32 %v891_v45, %v823_v6  ;;  %v1415_v45 = vperm.slane %v1412_v23, 1 }
 0x14d   : > { %v1023_v46 = vpop.f32.mrf.mxu2  ;;  %v1043_v47 = vpop.f32.mrf.mxu3 }
 0x14e   : > { %v1048_v13 = vadd.f32 %v1023_v46, %v936_v9  ;;  %v1049_v14 = vadd.f32 %v1043_v47, %v937_v10 }
 0x14f   : > { %v983_v49 = vpop.f32.mrf.mxu0 }
 0x150   : > { %v1003_v50 = vpop.f32.mrf.mxu1  ;;  %v1046_v19 = vadd.f32 %v983_v49, %v934_v15 }
 0x151   : > { %v1047_v20 = vadd.f32 %v1003_v50, %v935_v16 }
 0x156   : > { %v1135_v60 = vpop.f32.mrf.mxu2 }
 0x157   : > { %v1095_v63 = vpop.f32.mrf.mxu0  ;;  %v1160_v17 = vadd.f32 %v1135_v60, %v1048_v13 }
 0x158   : > { %v1115_v0 = vpop.f32.mrf.mxu1  ;;  %v1158_v24 = vadd.f32 %v1095_v63, %v1046_v19 }
 0x159   : > { %v1159_v25 = vadd.f32 %v1115_v0, %v1047_v20 }
 0x15d   : > { %v1155_v57 = vpop.f32.mrf.mxu3 }
 0x15e   : > { %v1161_v18 = vadd.f32 %v1155_v57, %v1049_v14 }
 0x165   : > { %v1247_v7 = vpop.f32.mrf.mxu2  ;;  %v1267_v8 = vpop.f32.mrf.mxu3 }
 0x166   : > { %v1272_v21 = vadd.f32 %v1247_v7, %v1160_v17  ;;  %v1273_v22 = vadd.f32 %v1267_v8, %v1161_v18 }
 0x167   : > { %v1207_v11 = vpop.f32.mrf.mxu0  ;;  %v1227_v12 = vpop.f32.mrf.mxu1 }
 0x168   : > { %v1270_v30 = vadd.f32 %v1207_v11, %v1158_v24  ;;  %v1271_v31 = vadd.f32 %v1227_v12, %v1159_v25 }
 0x175   : > { %v1359_v26 = vpop.f32.mrf.mxu2  ;;  %v1379_v27 = vpop.f32.mrf.mxu3 }
 0x176   : > { %v1384_v28 = vadd.f32 %v1359_v26, %v1272_v21  ;;  %v1385_v29 = vadd.f32 %v1379_v27, %v1273_v22 }
 0x177   : > { %v1319_v33 = vpop.f32.mrf.mxu0  ;;  %v1339_v34 = vpop.f32.mrf.mxu1 }
 0x178   : > { %vm1388_vm10 = vcmp.gt.f32.partialorder %v1384_v28, 0.0  ;;  %v1392_v35 = vmul.f32 0.01, %v1384_v28  ;;  %vm1389_vm11 = vcmp.gt.f32.partialorder %v1385_v29, 0.0  ;;  %v1393_v36 = vmul.f32 0.01, %v1385_v29 }
 0x179   : > { %v1382_v37 = vadd.f32 %v1319_v33, %v1270_v30  ;;  %v1383_v38 = vadd.f32 %v1339_v34, %v1271_v31 }
 0x17a   : > { %v1396_v39 = vsel %vm1388_vm10, %v1384_v28, %v1392_v35  ;;  %v1397_v40 = vsel %vm1389_vm11, %v1385_v29, %v1393_v36 }
 0x17b   : > { %v1403_v43 = vrot.slane %v1396_v39, 4  ;;  %v1424_v44 = vmul.f32 %v1416_v32, %v1396_v39  ;;  %vm1386_vm12 = vcmp.gt.f32.partialorder %v1382_v37, 0.0  ;;  %v1404_v46 = vrot.slane %v1397_v40, 2 }
 0x17c   : > { %v1390_v47 = vmul.f32 0.01, %v1382_v37  ;;  %vm1387_vm13 = vcmp.gt.f32.partialorder %v1383_v38, 0.0  ;;  %v1391_v48 = vmul.f32 0.01, %v1383_v38  ;;  %v1425_v54 = vmul.f32 %v1417_v42, %v1397_v40 }
 0x17d   : > { %v1407_v55 = vsel %vm1406_vm14, %v1403_v43, %v1404_v46  ;;  %v1437_v56 = vmul.f32 %v1424_v44, %v1424_v44  ;;  %v1429_v3 = vsel %vm397_vm0, %v1424_v44, 0.0 }
 0x17e   : > { %v1394_v49 = vsel %vm1386_vm12, %v1382_v37, %v1390_v47  ;;  %v1395_v50 = vsel %vm1387_vm13, %v1383_v38, %v1391_v48  ;;  %v1438_v0 = vmul.f32 %v1425_v54, %v1425_v54  ;;  %v1431_v7 = vsel %vm397_vm0, %v1425_v54, 0.0 }
 0x17f   : > { %v1422_v51 = vmul.f32 %v1414_v41, %v1394_v49  ;;  %v1402_v52 = vrot.slane %v1395_v50, 6  ;;  %v1423_v53 = vmul.f32 %v1415_v45, %v1395_v50  ;;  %v1442_v6 = vsel %vm397_vm0, %v1437_v56, 0.0 }
 0x180   : > { %v1444_v10 = vsel %vm397_vm0, %v1438_v0, 0.0 }
 0x181   : > { %v1435_v57 = vmul.f32 %v1422_v51, %v1422_v51  ;;  %v1405_v58 = vsel %vm397_vm0, %v1394_v49, %v1402_v52  ;;  %v1436_v59 = vmul.f32 %v1423_v53, %v1423_v53  ;;  %v1426_v60 = vsel %vm397_vm0, %v1422_v51, 0.0 }
 0x182   : > { %v1409_v61 = vsel %vm1408_vm15, %v1405_v58, %v1407_v55  ;;  %v1427_v62 = vsel %vm397_vm0, %v1423_v53, 0.0 }
 0x183   : > { %1411 = vst [vmem:[%s364_s29] sm:$0xff] %v1409_v61  ;;  %v1428_v63 = vadd.f32 %v1427_v62, %v1426_v60  ;;  %v1439_v1 = vsel %vm397_vm0, %v1435_v57, 0.0  ;;  %v1440_v2 = vsel %vm397_vm0, %v1436_v59, 0.0 }
 0x184   : > { %v1441_v4 = vadd.f32 %v1440_v2, %v1439_v1 }
 0x185   : > { %v1430_v5 = vadd.f32 %v1429_v3, %v1428_v63 }
 0x186   : > { %v1443_v8 = vadd.f32 %v1442_v6, %v1441_v4 }
 0x187   : > { %v1432_v9 = vadd.f32 %v1431_v7, %v1430_v5 }
 0x188   : > { %v1445_v11 = vadd.f32 %v1444_v10, %v1443_v8 }
 0x189   : > { %1433 = vadd.xlane.f32.xlu2 %v1432_v9 }
 0x18a   : > { %1446 = vadd.xlane.f32.xlu0 %v1445_v11 }
 0x1fc   : > { %v1434_v12 = vpop.xlane.xlu2 %1433 }
 0x1fd   : > { %v1447_v13 = vpop.xlane.xlu0 %1446 }
 0x1fe   : > { %v1449_v14 = vsel %vm1448_vm1, %v1434_v12, %v1447_v13 }
 0x1ff   : > { %1451 = vst.msk [vmem:[%s373_s11] sm:$0x3] %vm1450_vm2, %v1449_v14 }
 0x200 PF: > { %s17_s25 = sadd.s32 1, %s1806_s25   ;;  %s2067_s21 = smov %s1798_s23 }
 0x201   : > { %p14_p10 = scmp.ge.s32.totalorder %s17_s25, 8   ;;  %s2068_s22 = smov %s1802_s24 }
 0x202   : > { %s2069_s23 = smov %s2072_s26  ;;  %s2070_s24 = smov %s2076_s27 }
 0x203   :  { %16 = sbr.rel (!%p14_p10) target bundleno = 3 (0x3), region = 96 }

</bundles_post_ra>
